<compile_context>
chip_gen: v7x
topology: tpu7x:2x2x1
jax: 0.10.0
libtpu: 0.0.40
codegen_flags: <defaults>
</compile_context>

<pallas_src>
import functools
import math

import jax
import jax.numpy as jnp
from jax.experimental import pallas as pl
from jax.experimental.pallas import tpu as pltpu


def _layer_norm(x, gamma, beta, eps=1e-5):
    mu = jnp.mean(x, axis=-1, keepdims=True)
    var = jnp.mean((x - mu) ** 2, axis=-1, keepdims=True)
    return (x - mu) * jax.lax.rsqrt(var + eps) * gamma + beta


def vit_encoder_kernel(src_ref,
                       g1_ref, b1_ref,
                       wq_ref, bq_ref, wkv_ref, bkv_ref,
                       g2_ref, b2_ref,
                       w1_ref, bm1_ref, w2_ref, bm2_ref,
                       out_ref,
                       x1_scr, kv_scr, attn_scr,
                       *, num_head, block_q, mlp_chunk):
    f32 = jnp.float32
    cdt = wq_ref.dtype                       # MXU compute dtype (bf16)
    qi = pl.program_id(1)

    L, D = x1_scr.shape
    Dh = D // num_head

    # ---- once per batch row: LayerNorm1 over the full sequence + fused K|V proj ----
    @pl.when(qi == 0)
    def _():
        src_f = src_ref[0].astype(f32)                          # (L, D)
        x1_f = _layer_norm(src_f, g1_ref[...], b1_ref[...])
        x1c = x1_f.astype(cdt)
        x1_scr[...] = x1c
        kv = jnp.dot(x1c, wkv_ref[...], preferred_element_type=f32) + bkv_ref[...]
        kv_scr[...] = kv.astype(cdt)                            # (L, 2D) bf16

    # ---- per query tile ----
    qstart = pl.multiple_of(qi * block_q, block_q)
    src_q = src_ref[:, pl.ds(qstart, block_q), :][0].astype(f32)   # (block_q, D)
    x1_q = x1_scr[pl.ds(qstart, block_q), :]                        # (block_q, D) bf16

    # Q projection (1/sqrt(Dh) pre-folded into wq/bq on the host)
    q = jnp.dot(x1_q, wq_ref[...], preferred_element_type=f32) + bq_ref[...]
    qc = q.astype(cdt)
    kvc = kv_scr[...]                                               # (L, 2D) bf16

    # per-head attention; transpose-free QK^T; each head writes its scratch slice
    for h in range(num_head):
        kc = kvc[:, h * Dh:(h + 1) * Dh]
        vc = kvc[:, D + h * Dh:D + (h + 1) * Dh]
        s = jax.lax.dot_general(qc[:, h * Dh:(h + 1) * Dh], kc,
                                dimension_numbers=(((1,), (1,)), ((), ())),
                                preferred_element_type=f32)         # (block_q, L)
        s = s - jnp.max(s, axis=-1, keepdims=True)
        p = jnp.exp(s)
        p = p * pl.reciprocal(jnp.sum(p, axis=-1, keepdims=True), approx=True)
        attn_scr[:, h * Dh:(h + 1) * Dh] = jnp.dot(
            p.astype(cdt), vc, preferred_element_type=f32)

    # ---- residual 1 (dropout = identity) ----
    src2 = src_q + attn_scr[...]

    # ---- LayerNorm 2 + MLP (hidden dim tiled to bound the live f32 GELU slab) ----
    x2 = _layer_norm(src2, g2_ref[...], b2_ref[...])
    x2c = x2.astype(cdt)
    hidden = w1_ref.shape[1]
    nchunks = hidden // mlp_chunk

    def mlp_body(c, acc):
        start = pl.multiple_of(c * mlp_chunk, mlp_chunk)
        hcol = jnp.dot(x2c, w1_ref[:, pl.ds(start, mlp_chunk)],
                       preferred_element_type=f32)
        hcol = hcol + bm1_ref[:, pl.ds(start, mlp_chunk)]
        # tanh GELU routes to the EUP slot; error << bf16-matmul tolerance
        hcol = jax.nn.gelu(hcol, approximate=True)
        return acc + jnp.dot(hcol.astype(cdt), w2_ref[pl.ds(start, mlp_chunk), :],
                             preferred_element_type=f32)

    y = jax.lax.fori_loop(0, nchunks, mlp_body,
                          jnp.zeros((block_q, D), f32), unroll=True)
    y = y + bm2_ref[...]

    # ---- residual 2 (dropout = identity) ----
    out_ref[0] = (src2 + y).astype(out_ref.dtype)


def vit_encoder_layer(src, params, num_head, *, block_q=None,
                      compute_dtype=jnp.bfloat16):
    (g1, b1, wq, bq, wk, bk, wv, bv, g2, b2, w1, bm1, w2, bm2) = params
    B, L, D = src.shape
    assert D % num_head == 0
    Dh = D // num_head
    scale = 1.0 / math.sqrt(Dh)

    # ---- host-side weight prep: fold 1/sqrt(Dh) into Wq/bq, fuse K|V, cast to bf16 ----
    wq_c = (wq * scale).astype(compute_dtype)
    bq_s = (bq * scale).astype(jnp.float32)
    wkv = jnp.concatenate([wk, wv], axis=1).astype(compute_dtype)
    bkv = jnp.concatenate([bk, bv], axis=1).astype(jnp.float32)
    w1_c = w1.astype(compute_dtype)
    w2_c = w2.astype(compute_dtype)

    # query tile: largest multiple of 8 dividing L and <= 256 (keeps >=2 grid points
    # for megacore when possible); fall back to full L only if no such divisor exists.
    # TODO(synk): pad L to a multiple of 8 instead of the full-L fallback (e.g. L=197).
    if block_q is None or L % block_q != 0 or (block_q != L and block_q % 8 != 0):
        cands = [d for d in range(8, min(L, 256) + 1, 8) if L % d == 0]
        block_q = max(cands) if cands else L
    nq = L // block_q

    # MLP hidden-dim chunk (multiple of 128 dividing the hidden width when possible)
    hidden = w1.shape[1]
    mlp_chunk = hidden
    for c in (1024, 512, 256, 128):
        if c <= hidden and hidden % c == 0:
            mlp_chunk = c
            break

    consts = (g1, b1, wq_c, bq_s, wkv, bkv, g2, b2, w1_c, bm1, w2_c, bm2)

    def nbytes(shape, dtype):
        return math.prod(shape) * jnp.dtype(dtype).itemsize

    def build(use_buffered):
        def const_spec(arr):
            shp = arr.shape
            kwargs = {}
            if use_buffered:
                kwargs["pipeline_mode"] = pl.Buffered(1)   # index never changes
            return pl.BlockSpec(shp, lambda b, qi: (0,) * len(shp), **kwargs)

        src_spec = pl.BlockSpec((1, L, D), lambda b, qi: (b, 0, 0))
        out_spec = pl.BlockSpec((1, block_q, D), lambda b, qi: (b, qi, 0))
        in_specs = [src_spec] + [const_spec(c) for c in consts]

        # ---- VMEM budget: blocks, weights, scratches and major in-kernel intermediates ----
        w_bytes = sum(nbytes(c.shape, c.dtype) for c in consts)
        est = (
            2 * nbytes((L, D), src.dtype)                       # src block (x2 buffers)
            + 2 * nbytes((block_q, D), src.dtype)               # out block (x2 buffers)
            + (1 if use_buffered else 2) * w_bytes              # weights / constants
            + nbytes((L, D), compute_dtype)                     # x1 scratch
            + nbytes((L, 2 * D), compute_dtype)                 # K|V scratch
            + nbytes((block_q, D), jnp.float32)                 # attention scratch
            + nbytes((L, 2 * D), jnp.float32)                   # kv f32 intermediate
            + 3 * nbytes((block_q, L), jnp.float32)             # per-head scores/probs
            + 2 * nbytes((block_q, mlp_chunk), jnp.float32)     # GELU hidden chunk
            + 6 * nbytes((block_q, D), jnp.float32)             # q/x2/src2/y/acc etc.
        )
        vmem_limit = est + (16 << 20)                           # internal-scratch headroom
        try:
            info = pltpu.get_tpu_info()
            phys = int(getattr(info, "vmem_capacity_bytes", 64 << 20))
        except Exception:
            phys = 64 << 20
        vmem_limit = int(max(32 << 20, min(vmem_limit, phys - (8 << 20))))

        kernel = functools.partial(vit_encoder_kernel, num_head=num_head,
                                   block_q=block_q, mlp_chunk=mlp_chunk)
        return pl.pallas_call(
            kernel,
            out_shape=jax.ShapeDtypeStruct((B, L, D), src.dtype),
            grid_spec=pltpu.PrefetchScalarGridSpec(
                num_scalar_prefetch=0,
                grid=(B, nq),
                in_specs=in_specs,
                out_specs=out_spec,
                scratch_shapes=[
                    pltpu.VMEM((L, D), compute_dtype),        # LN1(src), full sequence
                    pltpu.VMEM((L, 2 * D), compute_dtype),    # fused K|V, full sequence
                    pltpu.VMEM((block_q, D), jnp.float32),    # attention output tile
                ],
            ),
            compiler_params=pltpu.CompilerParams(
                # qi must be "arbitrary": the K|V scratch persists across query tiles.
                dimension_semantics=("parallel", "arbitrary"),
                vmem_limit_bytes=vmem_limit),
        )

    try:
        out = build(True)(src, *consts)
        return jax.block_until_ready(out)
    except Exception:
        # pipeline_mode=pl.Buffered(1) not supported on this jax build: fall back.
        out = build(False)(src, *consts)
        return jax.block_until_ready(out)


def make_params(key, D, up_scale=4):
    ks = jax.random.split(key, 8)

    def w(k, shape, scale=0.02):
        return (scale * jax.random.normal(k, shape)).astype(jnp.float32)

    return (
        jnp.ones((1, D), jnp.float32), jnp.zeros((1, D), jnp.float32),   # ln1 gamma/beta
        w(ks[0], (D, D)), w(ks[1], (1, D)),                              # Wq (in,out), bq
        w(ks[2], (D, D)), w(ks[3], (1, D)),                              # Wk, bk
        w(ks[4], (D, D)), w(ks[5], (1, D)),                              # Wv, bv
        jnp.ones((1, D), jnp.float32), jnp.zeros((1, D), jnp.float32),   # ln2 gamma/beta
        w(ks[6], (D, D * up_scale)), jnp.zeros((1, D * up_scale), jnp.float32),  # W1, b1
        w(ks[7], (D * up_scale, D)), jnp.zeros((1, D), jnp.float32),             # W2, b2
    )


def reference(src, params, num_head):
    (g1, b1, wq, bq, wk, bk, wv, bv, g2, b2, w1, bb1, w2, bb2) = params
    B, L, D = src.shape
    Dh = D // num_head
    x1 = _layer_norm(src, g1[0], b1[0])
    q = x1 @ wq + bq[0]
    k = x1 @ wk + bk[0]
    v = x1 @ wv + bv[0]

    def split(t):  # (B,L,D) -> (B,H,L,Dh)
        return t.reshape(B, L, num_head, Dh).transpose(0, 2, 1, 3)

    qh, kh, vh = split(q), split(k), split(v)
    s = jnp.einsum("bhld,bhmd->bhlm", qh, kh) / jnp.sqrt(jnp.float32(Dh))
    p = jax.nn.softmax(s, axis=-1)
    o = jnp.einsum("bhlm,bhmd->bhld", p, vh).transpose(0, 2, 1, 3).reshape(B, L, D)
    src2 = src + o
    x2 = _layer_norm(src2, g2[0], b2[0])
    h1 = jax.nn.gelu(x2 @ w1 + bb1[0], approximate=False)
    y = h1 @ w2 + bb2[0]
    return src2 + y


if __name__ == "__main__":
    B, L, D, H = 2, 8, 32, 4   # batch, seq, embed dim, heads
    key = jax.random.PRNGKey(0)
    k_src, k_par = jax.random.split(key)
    src = jax.random.normal(k_src, (B, L, D), dtype=jnp.float32)
    params = make_params(k_par, D)

    out = vit_encoder_layer(src, params, num_head=H)
    out = jax.block_until_ready(out)

    ref = reference(src, params, num_head=H)
    assert out.shape == (B, L, D)
    # Kernel uses bf16 MXU inputs with f32 accumulation and tanh-GELU; compare against
    # the f32 exact-GELU reference with a correspondingly looser tolerance.
    assert jnp.allclose(out, ref, atol=2e-2, rtol=2e-2), \
        f"max abs err {jnp.max(jnp.abs(out - ref))}"
    print("KERNEL_OK")
</pallas_src>

<mosaic_0001>
module attributes {stable_mosaic.version = 11 : i64} {
  func.func @vit_encoder_kernel(%arg0: i32, %arg1: i32, %arg2: memref<1x8x32xf32, #tpu.memory_space<vmem>>, %arg3: memref<1x32xf32, #tpu.memory_space<vmem>>, %arg4: memref<1x32xf32, #tpu.memory_space<vmem>>, %arg5: memref<32x32xbf16, #tpu.memory_space<vmem>>, %arg6: memref<1x32xf32, #tpu.memory_space<vmem>>, %arg7: memref<32x64xbf16, #tpu.memory_space<vmem>>, %arg8: memref<1x64xf32, #tpu.memory_space<vmem>>, %arg9: memref<1x32xf32, #tpu.memory_space<vmem>>, %arg10: memref<1x32xf32, #tpu.memory_space<vmem>>, %arg11: memref<32x128xbf16, #tpu.memory_space<vmem>>, %arg12: memref<1x128xf32, #tpu.memory_space<vmem>>, %arg13: memref<128x32xbf16, #tpu.memory_space<vmem>>, %arg14: memref<1x32xf32, #tpu.memory_space<vmem>>, %arg15: memref<1x8x32xf32, #tpu.memory_space<vmem>>, %arg16: memref<8x32xbf16, #tpu.memory_space<vmem>>, %arg17: memref<8x64xbf16, #tpu.memory_space<vmem>>, %arg18: memref<8x32xf32, #tpu.memory_space<vmem>>) attributes {dimension_semantics = [#tpu.dimension_semantics<parallel>, #tpu.dimension_semantics<arbitrary>], iteration_bounds = array<i64: 2, 1>, scalar_prefetch = 0 : i64, scratch_operands = 3 : i64, tpu.core_type = #tpu.core_type<tc>, window_params = [{transform_indices = @transform_0, window_bounds = array<i64: 1, 8, 32>}, {pipeline_mode = #tpu.pipeline_mode<synchronous>, transform_indices = @transform_1, window_bounds = array<i64: 1, 32>}, {pipeline_mode = #tpu.pipeline_mode<synchronous>, transform_indices = @transform_2, window_bounds = array<i64: 1, 32>}, {pipeline_mode = #tpu.pipeline_mode<synchronous>, transform_indices = @transform_3, window_bounds = array<i64: 32, 32>}, {pipeline_mode = #tpu.pipeline_mode<synchronous>, transform_indices = @transform_4, window_bounds = array<i64: 1, 32>}, {pipeline_mode = #tpu.pipeline_mode<synchronous>, transform_indices = @transform_5, window_bounds = array<i64: 32, 64>}, {pipeline_mode = #tpu.pipeline_mode<synchronous>, transform_indices = @transform_6, window_bounds = array<i64: 1, 64>}, {pipeline_mode = #tpu.pipeline_mode<synchronous>, transform_indices = @transform_7, window_bounds = array<i64: 1, 32>}, {pipeline_mode = #tpu.pipeline_mode<synchronous>, transform_indices = @transform_8, window_bounds = array<i64: 1, 32>}, {pipeline_mode = #tpu.pipeline_mode<synchronous>, transform_indices = @transform_9, window_bounds = array<i64: 32, 128>}, {pipeline_mode = #tpu.pipeline_mode<synchronous>, transform_indices = @transform_10, window_bounds = array<i64: 1, 128>}, {pipeline_mode = #tpu.pipeline_mode<synchronous>, transform_indices = @transform_11, window_bounds = array<i64: 128, 32>}, {pipeline_mode = #tpu.pipeline_mode<synchronous>, transform_indices = @transform_12, window_bounds = array<i64: 1, 32>}, {transform_indices = @transform_13, window_bounds = array<i64: 1, 8, 32>}]} {
    %c0_i32 = arith.constant 0 : i32
    %0 = arith.cmpi eq, %arg1, %c0_i32 : i32
    %1 = arith.extui %0 : i1 to i32
    %c0_i32_0 = arith.constant 0 : i32
    %2 = arith.cmpi ne, %1, %c0_i32_0 : i32
    scf.if %2 {
      %c0_57 = arith.constant 0 : index
      %c0_58 = arith.constant 0 : index
      %c0_59 = arith.constant 0 : index
      %147 = vector.load %arg2[%c0_57, %c0_58, %c0_59] : memref<1x8x32xf32, #tpu.memory_space<vmem>>, vector<1x8x32xf32>
      %148 = vector.shape_cast %147 : vector<1x8x32xf32> to vector<8x32xf32>
      %c0_60 = arith.constant 0 : index
      %c0_61 = arith.constant 0 : index
      %149 = vector.load %arg3[%c0_60, %c0_61] : memref<1x32xf32, #tpu.memory_space<vmem>>, vector<1x32xf32>
      %c0_62 = arith.constant 0 : index
      %c0_63 = arith.constant 0 : index
      %150 = vector.load %arg4[%c0_62, %c0_63] : memref<1x32xf32, #tpu.memory_space<vmem>>, vector<1x32xf32>
      %cst_64 = arith.constant dense<0.000000e+00> : vector<8xf32>
      %151 = vector.multi_reduction <add>, %148, %cst_64 [1] : vector<8x32xf32> to vector<8xf32>
      %152 = vector.shape_cast %151 : vector<8xf32> to vector<8x1xf32>
      %cst_65 = arith.constant 3.200000e+01 : f32
      %153 = vector.broadcast %cst_65 : f32 to vector<8x1xf32>
      %154 = arith.divf %152, %153 : vector<8x1xf32>
      %155 = vector.broadcast %154 : vector<8x1xf32> to vector<8x32xf32>
      %156 = arith.subf %148, %155 : vector<8x32xf32>
      %157 = arith.mulf %156, %156 : vector<8x32xf32>
      %cst_66 = arith.constant dense<0.000000e+00> : vector<8xf32>
      %158 = vector.multi_reduction <add>, %157, %cst_66 [1] : vector<8x32xf32> to vector<8xf32>
      %159 = vector.shape_cast %158 : vector<8xf32> to vector<8x1xf32>
      %cst_67 = arith.constant 3.200000e+01 : f32
      %160 = vector.broadcast %cst_67 : f32 to vector<8x1xf32>
      %161 = arith.divf %159, %160 : vector<8x1xf32>
      %162 = vector.broadcast %154 : vector<8x1xf32> to vector<8x32xf32>
      %163 = arith.subf %148, %162 : vector<8x32xf32>
      %cst_68 = arith.constant 9.99999974E-6 : f32
      %164 = vector.broadcast %cst_68 : f32 to vector<8x1xf32>
      %165 = arith.addf %161, %164 : vector<8x1xf32>
      %166 = math.rsqrt %165 : vector<8x1xf32>
      %167 = vector.broadcast %166 : vector<8x1xf32> to vector<8x32xf32>
      %168 = arith.mulf %163, %167 : vector<8x32xf32>
      %169 = vector.broadcast %149 : vector<1x32xf32> to vector<8x32xf32>
      %170 = arith.mulf %168, %169 : vector<8x32xf32>
      %171 = vector.broadcast %150 : vector<1x32xf32> to vector<8x32xf32>
      %172 = arith.addf %170, %171 : vector<8x32xf32>
      %173 = arith.truncf %172 : vector<8x32xf32> to vector<8x32xbf16>
      %c0_69 = arith.constant 0 : index
      %c0_70 = arith.constant 0 : index
      %174 = vector.load %arg16[%c0_69, %c0_70] : memref<8x32xbf16, #tpu.memory_space<vmem>>, vector<8x32xbf16>
      tpu.vector_store %arg16[%c0_69, %c0_70], %173 {strides = array<i32>} : memref<8x32xbf16, #tpu.memory_space<vmem>>, vector<8x32xbf16>,
      %c0_71 = arith.constant 0 : index
      %c0_72 = arith.constant 0 : index
      %175 = vector.load %arg7[%c0_71, %c0_72] : memref<32x64xbf16, #tpu.memory_space<vmem>>, vector<32x64xbf16>
      %cst_73 = arith.constant dense<0.000000e+00> : vector<8x64xf32>
      %176 = tpu.matmul %173, %175, %cst_73 {dimension_numbers = #tpu.dot_dimension_numbers<[1], [0], [0], [1], [0, 0, 1, 1], [], []>} : vector<8x32xbf16>, vector<32x64xbf16>, vector<8x64xf32> -> vector<8x64xf32>
      %c0_74 = arith.constant 0 : index
      %c0_75 = arith.constant 0 : index
      %177 = vector.load %arg8[%c0_74, %c0_75] : memref<1x64xf32, #tpu.memory_space<vmem>>, vector<1x64xf32>
      %178 = vector.broadcast %177 : vector<1x64xf32> to vector<8x64xf32>
      %179 = arith.addf %176, %178 : vector<8x64xf32>
      %180 = arith.truncf %179 : vector<8x64xf32> to vector<8x64xbf16>
      %c0_76 = arith.constant 0 : index
      %c0_77 = arith.constant 0 : index
      %181 = vector.load %arg17[%c0_76, %c0_77] : memref<8x64xbf16, #tpu.memory_space<vmem>>, vector<8x64xbf16>
      tpu.vector_store %arg17[%c0_76, %c0_77], %180 {strides = array<i32>} : memref<8x64xbf16, #tpu.memory_space<vmem>>, vector<8x64xbf16>,
    } else {
    }
    %c8_i32 = arith.constant 8 : i32
    %3 = arith.muli %arg1, %c8_i32 : i32
    %4 = tpu.assume_multiple %3, 8 : i32
    %c0 = arith.constant 0 : index
    %5 = arith.index_cast %4 : i32 to index
    %c0_1 = arith.constant 0 : index
    %6 = vector.load %arg2[%c0, %5, %c0_1] : memref<1x8x32xf32, #tpu.memory_space<vmem>>, vector<1x8x32xf32>
    %7 = vector.shape_cast %6 : vector<1x8x32xf32> to vector<8x32xf32>
    %8 = arith.index_cast %4 : i32 to index
    %c0_2 = arith.constant 0 : index
    %9 = vector.load %arg16[%8, %c0_2] : memref<8x32xbf16, #tpu.memory_space<vmem>>, vector<8x32xbf16>
    %c0_3 = arith.constant 0 : index
    %c0_4 = arith.constant 0 : index
    %10 = vector.load %arg5[%c0_3, %c0_4] : memref<32x32xbf16, #tpu.memory_space<vmem>>, vector<32x32xbf16>
    %cst = arith.constant dense<0.000000e+00> : vector<8x32xf32>
    %11 = tpu.matmul %9, %10, %cst {dimension_numbers = #tpu.dot_dimension_numbers<[1], [0], [0], [1], [0, 0, 1, 1], [], []>} : vector<8x32xbf16>, vector<32x32xbf16>, vector<8x32xf32> -> vector<8x32xf32>
    %c0_5 = arith.constant 0 : index
    %c0_6 = arith.constant 0 : index
    %12 = vector.load %arg6[%c0_5, %c0_6] : memref<1x32xf32, #tpu.memory_space<vmem>>, vector<1x32xf32>
    %13 = vector.broadcast %12 : vector<1x32xf32> to vector<8x32xf32>
    %14 = arith.addf %11, %13 : vector<8x32xf32>
    %15 = arith.truncf %14 : vector<8x32xf32> to vector<8x32xbf16>
    %c0_7 = arith.constant 0 : index
    %c0_8 = arith.constant 0 : index
    %16 = vector.load %arg17[%c0_7, %c0_8] : memref<8x64xbf16, #tpu.memory_space<vmem>>, vector<8x64xbf16>
    %17 = vector.extract_strided_slice %16 {offsets = [0, 0], sizes = [8, 8], strides = [1, 1]} : vector<8x64xbf16> to vector<8x8xbf16>
    %18 = vector.extract_strided_slice %16 {offsets = [0, 32], sizes = [8, 8], strides = [1, 1]} : vector<8x64xbf16> to vector<8x8xbf16>
    %19 = vector.extract_strided_slice %15 {offsets = [0, 0], sizes = [8, 8], strides = [1, 1]} : vector<8x32xbf16> to vector<8x8xbf16>
    %cst_9 = arith.constant dense<0.000000e+00> : vector<8x8xf32>
    %20 = tpu.matmul %19, %17, %cst_9 {dimension_numbers = #tpu.dot_dimension_numbers<[1], [1], [0], [0], [0, 0, 1, 0], [], []>} : vector<8x8xbf16>, vector<8x8xbf16>, vector<8x8xf32> -> vector<8x8xf32>
    %cst_10 = arith.constant dense<0xFF800000> : vector<8xf32>
    %21 = vector.multi_reduction <maximumf>, %20, %cst_10 [1] : vector<8x8xf32> to vector<8xf32>
    %22 = vector.shape_cast %21 : vector<8xf32> to vector<8x1xf32>
    %23 = vector.broadcast %22 : vector<8x1xf32> to vector<8x8xf32>
    %24 = arith.subf %20, %23 : vector<8x8xf32>
    %25 = math.exp %24 : vector<8x8xf32>
    %cst_11 = arith.constant dense<0.000000e+00> : vector<8xf32>
    %26 = vector.multi_reduction <add>, %25, %cst_11 [1] : vector<8x8xf32> to vector<8xf32>
    %27 = vector.shape_cast %26 : vector<8xf32> to vector<8x1xf32>
    %28 = tpu.reciprocal %27 {approx = true} : vector<8x1xf32> -> vector<8x1xf32>
    %29 = vector.broadcast %28 : vector<8x1xf32> to vector<8x8xf32>
    %30 = arith.mulf %25, %29 : vector<8x8xf32>
    %31 = arith.truncf %30 : vector<8x8xf32> to vector<8x8xbf16>
    %cst_12 = arith.constant dense<0.000000e+00> : vector<8x8xf32>
    %32 = tpu.matmul %31, %18, %cst_12 {dimension_numbers = #tpu.dot_dimension_numbers<[1], [0], [0], [1], [0, 0, 1, 1], [], []>} : vector<8x8xbf16>, vector<8x8xbf16>, vector<8x8xf32> -> vector<8x8xf32>
    %c0_13 = arith.constant 0 : index
    %c0_14 = arith.constant 0 : index
    %33 = vector.load %arg18[%c0_13, %c0_14] : memref<8x32xf32, #tpu.memory_space<vmem>>, vector<8x8xf32>
    tpu.vector_store %arg18[%c0_13, %c0_14], %32 {strides = array<i32>} : memref<8x32xf32, #tpu.memory_space<vmem>>, vector<8x8xf32>,
    %34 = vector.extract_strided_slice %16 {offsets = [0, 8], sizes = [8, 8], strides = [1, 1]} : vector<8x64xbf16> to vector<8x8xbf16>
    %35 = vector.extract_strided_slice %16 {offsets = [0, 40], sizes = [8, 8], strides = [1, 1]} : vector<8x64xbf16> to vector<8x8xbf16>
    %36 = vector.extract_strided_slice %15 {offsets = [0, 8], sizes = [8, 8], strides = [1, 1]} : vector<8x32xbf16> to vector<8x8xbf16>
    %cst_15 = arith.constant dense<0.000000e+00> : vector<8x8xf32>
    %37 = tpu.matmul %36, %34, %cst_15 {dimension_numbers = #tpu.dot_dimension_numbers<[1], [1], [0], [0], [0, 0, 1, 0], [], []>} : vector<8x8xbf16>, vector<8x8xbf16>, vector<8x8xf32> -> vector<8x8xf32>
    %cst_16 = arith.constant dense<0xFF800000> : vector<8xf32>
    %38 = vector.multi_reduction <maximumf>, %37, %cst_16 [1] : vector<8x8xf32> to vector<8xf32>
    %39 = vector.shape_cast %38 : vector<8xf32> to vector<8x1xf32>
    %40 = vector.broadcast %39 : vector<8x1xf32> to vector<8x8xf32>
    %41 = arith.subf %37, %40 : vector<8x8xf32>
    %42 = math.exp %41 : vector<8x8xf32>
    %cst_17 = arith.constant dense<0.000000e+00> : vector<8xf32>
    %43 = vector.multi_reduction <add>, %42, %cst_17 [1] : vector<8x8xf32> to vector<8xf32>
    %44 = vector.shape_cast %43 : vector<8xf32> to vector<8x1xf32>
    %45 = tpu.reciprocal %44 {approx = true} : vector<8x1xf32> -> vector<8x1xf32>
    %46 = vector.broadcast %45 : vector<8x1xf32> to vector<8x8xf32>
    %47 = arith.mulf %42, %46 : vector<8x8xf32>
    %48 = arith.truncf %47 : vector<8x8xf32> to vector<8x8xbf16>
    %cst_18 = arith.constant dense<0.000000e+00> : vector<8x8xf32>
    %49 = tpu.matmul %48, %35, %cst_18 {dimension_numbers = #tpu.dot_dimension_numbers<[1], [0], [0], [1], [0, 0, 1, 1], [], []>} : vector<8x8xbf16>, vector<8x8xbf16>, vector<8x8xf32> -> vector<8x8xf32>
    %c0_19 = arith.constant 0 : index
    %c8 = arith.constant 8 : index
    %50 = vector.load %arg18[%c0_19, %c8] : memref<8x32xf32, #tpu.memory_space<vmem>>, vector<8x8xf32>
    tpu.vector_store %arg18[%c0_19, %c8], %49 {strides = array<i32>} : memref<8x32xf32, #tpu.memory_space<vmem>>, vector<8x8xf32>,
    %51 = vector.extract_strided_slice %16 {offsets = [0, 16], sizes = [8, 8], strides = [1, 1]} : vector<8x64xbf16> to vector<8x8xbf16>
    %52 = vector.extract_strided_slice %16 {offsets = [0, 48], sizes = [8, 8], strides = [1, 1]} : vector<8x64xbf16> to vector<8x8xbf16>
    %53 = vector.extract_strided_slice %15 {offsets = [0, 16], sizes = [8, 8], strides = [1, 1]} : vector<8x32xbf16> to vector<8x8xbf16>
    %cst_20 = arith.constant dense<0.000000e+00> : vector<8x8xf32>
    %54 = tpu.matmul %53, %51, %cst_20 {dimension_numbers = #tpu.dot_dimension_numbers<[1], [1], [0], [0], [0, 0, 1, 0], [], []>} : vector<8x8xbf16>, vector<8x8xbf16>, vector<8x8xf32> -> vector<8x8xf32>
    %cst_21 = arith.constant dense<0xFF800000> : vector<8xf32>
    %55 = vector.multi_reduction <maximumf>, %54, %cst_21 [1] : vector<8x8xf32> to vector<8xf32>
    %56 = vector.shape_cast %55 : vector<8xf32> to vector<8x1xf32>
    %57 = vector.broadcast %56 : vector<8x1xf32> to vector<8x8xf32>
    %58 = arith.subf %54, %57 : vector<8x8xf32>
    %59 = math.exp %58 : vector<8x8xf32>
    %cst_22 = arith.constant dense<0.000000e+00> : vector<8xf32>
    %60 = vector.multi_reduction <add>, %59, %cst_22 [1] : vector<8x8xf32> to vector<8xf32>
    %61 = vector.shape_cast %60 : vector<8xf32> to vector<8x1xf32>
    %62 = tpu.reciprocal %61 {approx = true} : vector<8x1xf32> -> vector<8x1xf32>
    %63 = vector.broadcast %62 : vector<8x1xf32> to vector<8x8xf32>
    %64 = arith.mulf %59, %63 : vector<8x8xf32>
    %65 = arith.truncf %64 : vector<8x8xf32> to vector<8x8xbf16>
    %cst_23 = arith.constant dense<0.000000e+00> : vector<8x8xf32>
    %66 = tpu.matmul %65, %52, %cst_23 {dimension_numbers = #tpu.dot_dimension_numbers<[1], [0], [0], [1], [0, 0, 1, 1], [], []>} : vector<8x8xbf16>, vector<8x8xbf16>, vector<8x8xf32> -> vector<8x8xf32>
    %c0_24 = arith.constant 0 : index
    %c16 = arith.constant 16 : index
    %67 = vector.load %arg18[%c0_24, %c16] : memref<8x32xf32, #tpu.memory_space<vmem>>, vector<8x8xf32>
    tpu.vector_store %arg18[%c0_24, %c16], %66 {strides = array<i32>} : memref<8x32xf32, #tpu.memory_space<vmem>>, vector<8x8xf32>,
    %68 = vector.extract_strided_slice %16 {offsets = [0, 24], sizes = [8, 8], strides = [1, 1]} : vector<8x64xbf16> to vector<8x8xbf16>
    %69 = vector.extract_strided_slice %16 {offsets = [0, 56], sizes = [8, 8], strides = [1, 1]} : vector<8x64xbf16> to vector<8x8xbf16>
    %70 = vector.extract_strided_slice %15 {offsets = [0, 24], sizes = [8, 8], strides = [1, 1]} : vector<8x32xbf16> to vector<8x8xbf16>
    %cst_25 = arith.constant dense<0.000000e+00> : vector<8x8xf32>
    %71 = tpu.matmul %70, %68, %cst_25 {dimension_numbers = #tpu.dot_dimension_numbers<[1], [1], [0], [0], [0, 0, 1, 0], [], []>} : vector<8x8xbf16>, vector<8x8xbf16>, vector<8x8xf32> -> vector<8x8xf32>
    %cst_26 = arith.constant dense<0xFF800000> : vector<8xf32>
    %72 = vector.multi_reduction <maximumf>, %71, %cst_26 [1] : vector<8x8xf32> to vector<8xf32>
    %73 = vector.shape_cast %72 : vector<8xf32> to vector<8x1xf32>
    %74 = vector.broadcast %73 : vector<8x1xf32> to vector<8x8xf32>
    %75 = arith.subf %71, %74 : vector<8x8xf32>
    %76 = math.exp %75 : vector<8x8xf32>
    %cst_27 = arith.constant dense<0.000000e+00> : vector<8xf32>
    %77 = vector.multi_reduction <add>, %76, %cst_27 [1] : vector<8x8xf32> to vector<8xf32>
    %78 = vector.shape_cast %77 : vector<8xf32> to vector<8x1xf32>
    %79 = tpu.reciprocal %78 {approx = true} : vector<8x1xf32> -> vector<8x1xf32>
    %80 = vector.broadcast %79 : vector<8x1xf32> to vector<8x8xf32>
    %81 = arith.mulf %76, %80 : vector<8x8xf32>
    %82 = arith.truncf %81 : vector<8x8xf32> to vector<8x8xbf16>
    %cst_28 = arith.constant dense<0.000000e+00> : vector<8x8xf32>
    %83 = tpu.matmul %82, %69, %cst_28 {dimension_numbers = #tpu.dot_dimension_numbers<[1], [0], [0], [1], [0, 0, 1, 1], [], []>} : vector<8x8xbf16>, vector<8x8xbf16>, vector<8x8xf32> -> vector<8x8xf32>
    %c0_29 = arith.constant 0 : index
    %c24 = arith.constant 24 : index
    %84 = vector.load %arg18[%c0_29, %c24] : memref<8x32xf32, #tpu.memory_space<vmem>>, vector<8x8xf32>
    tpu.vector_store %arg18[%c0_29, %c24], %83 {strides = array<i32>} : memref<8x32xf32, #tpu.memory_space<vmem>>, vector<8x8xf32>,
    %c0_30 = arith.constant 0 : index
    %c0_31 = arith.constant 0 : index
    %85 = vector.load %arg18[%c0_30, %c0_31] : memref<8x32xf32, #tpu.memory_space<vmem>>, vector<8x32xf32>
    %86 = arith.addf %7, %85 : vector<8x32xf32>
    %c0_32 = arith.constant 0 : index
    %c0_33 = arith.constant 0 : index
    %87 = vector.load %arg9[%c0_32, %c0_33] : memref<1x32xf32, #tpu.memory_space<vmem>>, vector<1x32xf32>
    %c0_34 = arith.constant 0 : index
    %c0_35 = arith.constant 0 : index
    %88 = vector.load %arg10[%c0_34, %c0_35] : memref<1x32xf32, #tpu.memory_space<vmem>>, vector<1x32xf32>
    %cst_36 = arith.constant dense<0.000000e+00> : vector<8xf32>
    %89 = vector.multi_reduction <add>, %86, %cst_36 [1] : vector<8x32xf32> to vector<8xf32>
    %90 = vector.shape_cast %89 : vector<8xf32> to vector<8x1xf32>
    %cst_37 = arith.constant 3.200000e+01 : f32
    %91 = vector.broadcast %cst_37 : f32 to vector<8x1xf32>
    %92 = arith.divf %90, %91 : vector<8x1xf32>
    %93 = vector.broadcast %92 : vector<8x1xf32> to vector<8x32xf32>
    %94 = arith.subf %86, %93 : vector<8x32xf32>
    %95 = arith.mulf %94, %94 : vector<8x32xf32>
    %cst_38 = arith.constant dense<0.000000e+00> : vector<8xf32>
    %96 = vector.multi_reduction <add>, %95, %cst_38 [1] : vector<8x32xf32> to vector<8xf32>
    %97 = vector.shape_cast %96 : vector<8xf32> to vector<8x1xf32>
    %cst_39 = arith.constant 3.200000e+01 : f32
    %98 = vector.broadcast %cst_39 : f32 to vector<8x1xf32>
    %99 = arith.divf %97, %98 : vector<8x1xf32>
    %100 = vector.broadcast %92 : vector<8x1xf32> to vector<8x32xf32>
    %101 = arith.subf %86, %100 : vector<8x32xf32>
    %cst_40 = arith.constant 9.99999974E-6 : f32
    %102 = vector.broadcast %cst_40 : f32 to vector<8x1xf32>
    %103 = arith.addf %99, %102 : vector<8x1xf32>
    %104 = math.rsqrt %103 : vector<8x1xf32>
    %105 = vector.broadcast %104 : vector<8x1xf32> to vector<8x32xf32>
    %106 = arith.mulf %101, %105 : vector<8x32xf32>
    %107 = vector.broadcast %87 : vector<1x32xf32> to vector<8x32xf32>
    %108 = arith.mulf %106, %107 : vector<8x32xf32>
    %109 = vector.broadcast %88 : vector<1x32xf32> to vector<8x32xf32>
    %110 = arith.addf %108, %109 : vector<8x32xf32>
    %111 = arith.truncf %110 : vector<8x32xf32> to vector<8x32xbf16>
    %cst_41 = arith.constant 0.000000e+00 : f32
    %112 = vector.broadcast %cst_41 : f32 to vector<8x32xf32>
    %c0_i32_42 = arith.constant 0 : i32
    %c128_i32 = arith.constant 128 : i32
    %113 = arith.muli %c0_i32_42, %c128_i32 : i32
    %114 = tpu.assume_multiple %113, 128 : i32
    %c0_43 = arith.constant 0 : index
    %115 = arith.index_cast %114 : i32 to index
    %116 = vector.load %arg11[%c0_43, %115] : memref<32x128xbf16, #tpu.memory_space<vmem>>, vector<32x128xbf16>
    %cst_44 = arith.constant dense<0.000000e+00> : vector<8x128xf32>
    %117 = tpu.matmul %111, %116, %cst_44 {dimension_numbers = #tpu.dot_dimension_numbers<[1], [0], [0], [1], [0, 0, 1, 1], [], []>} : vector<8x32xbf16>, vector<32x128xbf16>, vector<8x128xf32> -> vector<8x128xf32>
    %c0_45 = arith.constant 0 : index
    %118 = arith.index_cast %114 : i32 to index
    %119 = vector.load %arg12[%c0_45, %118] : memref<1x128xf32, #tpu.memory_space<vmem>>, vector<1x128xf32>
    %120 = vector.broadcast %119 : vector<1x128xf32> to vector<8x128xf32>
    %121 = arith.addf %117, %120 : vector<8x128xf32>
    %122 = arith.mulf %121, %121 : vector<8x128xf32>
    %123 = arith.mulf %121, %122 : vector<8x128xf32>
    %cst_46 = arith.constant 4.471500e-02 : f32
    %124 = vector.broadcast %cst_46 : f32 to vector<8x128xf32>
    %125 = arith.mulf %124, %123 : vector<8x128xf32>
    %126 = arith.addf %121, %125 : vector<8x128xf32>
    %cst_47 = arith.constant 0.797884583 : f32
    %127 = vector.broadcast %cst_47 : f32 to vector<8x128xf32>
    %128 = arith.mulf %127, %126 : vector<8x128xf32>
    %129 = math.tanh %128 : vector<8x128xf32>
    %cst_48 = arith.constant 1.000000e+00 : f32
    %130 = vector.broadcast %cst_48 : f32 to vector<8x128xf32>
    %131 = arith.addf %130, %129 : vector<8x128xf32>
    %cst_49 = arith.constant 5.000000e-01 : f32
    %132 = vector.broadcast %cst_49 : f32 to vector<8x128xf32>
    %133 = arith.mulf %132, %131 : vector<8x128xf32>
    %134 = arith.mulf %121, %133 : vector<8x128xf32>
    %135 = arith.truncf %134 : vector<8x128xf32> to vector<8x128xbf16>
    %136 = arith.index_cast %114 : i32 to index
    %c0_50 = arith.constant 0 : index
    %137 = vector.load %arg13[%136, %c0_50] : memref<128x32xbf16, #tpu.memory_space<vmem>>, vector<128x32xbf16>
    %cst_51 = arith.constant dense<0.000000e+00> : vector<8x32xf32>
    %138 = tpu.matmul %135, %137, %cst_51 {dimension_numbers = #tpu.dot_dimension_numbers<[1], [0], [0], [1], [0, 0, 1, 1], [], []>} : vector<8x128xbf16>, vector<128x32xbf16>, vector<8x32xf32> -> vector<8x32xf32>
    %139 = arith.addf %112, %138 : vector<8x32xf32>
    %c1_i32 = arith.constant 1 : i32
    %c0_52 = arith.constant 0 : index
    %c0_53 = arith.constant 0 : index
    %140 = vector.load %arg14[%c0_52, %c0_53] : memref<1x32xf32, #tpu.memory_space<vmem>>, vector<1x32xf32>
    %141 = vector.broadcast %140 : vector<1x32xf32> to vector<8x32xf32>
    %142 = arith.addf %139, %141 : vector<8x32xf32>
    %143 = arith.addf %86, %142 : vector<8x32xf32>
    %c0_54 = arith.constant 0 : index
    %c0_55 = arith.constant 0 : index
    %c0_56 = arith.constant 0 : index
    %144 = vector.load %arg15[%c0_54, %c0_55, %c0_56] : memref<1x8x32xf32, #tpu.memory_space<vmem>>, vector<1x8x32xf32>
    %145 = vector.shape_cast %144 : vector<1x8x32xf32> to vector<8x32xf32>
    %146 = vector.shape_cast %143 : vector<8x32xf32> to vector<1x8x32xf32>
    tpu.vector_store %arg15[%c0_54, %c0_55, %c0_56], %146 {strides = array<i32>} : memref<1x8x32xf32, #tpu.memory_space<vmem>>, vector<1x8x32xf32>,
    return
  }
  func.func @transform_0(%arg0: i32, %arg1: i32) -> (i32, i32, i32) {
    %c0_i32 = arith.constant 0 : i32
    %c0_i32_0 = arith.constant 0 : i32
    %c0_i32_1 = arith.constant 0 : i32
    return %arg0, %c0_i32, %c0_i32_0 : i32, i32, i32
  }
  func.func @transform_1(%arg0: i32, %arg1: i32) -> (i32, i32) {
    %c0_i32 = arith.constant 0 : i32
    %c0_i32_0 = arith.constant 0 : i32
    %c0_i32_1 = arith.constant 0 : i32
    return %c0_i32, %c0_i32_0 : i32, i32
  }
  func.func @transform_2(%arg0: i32, %arg1: i32) -> (i32, i32) {
    %c0_i32 = arith.constant 0 : i32
    %c0_i32_0 = arith.constant 0 : i32
    %c0_i32_1 = arith.constant 0 : i32
    return %c0_i32, %c0_i32_0 : i32, i32
  }
  func.func @transform_3(%arg0: i32, %arg1: i32) -> (i32, i32) {
    %c0_i32 = arith.constant 0 : i32
    %c0_i32_0 = arith.constant 0 : i32
    %c0_i32_1 = arith.constant 0 : i32
    return %c0_i32, %c0_i32_0 : i32, i32
  }
  func.func @transform_4(%arg0: i32, %arg1: i32) -> (i32, i32) {
    %c0_i32 = arith.constant 0 : i32
    %c0_i32_0 = arith.constant 0 : i32
    %c0_i32_1 = arith.constant 0 : i32
    return %c0_i32, %c0_i32_0 : i32, i32
  }
  func.func @transform_5(%arg0: i32, %arg1: i32) -> (i32, i32) {
    %c0_i32 = arith.constant 0 : i32
    %c0_i32_0 = arith.constant 0 : i32
    %c0_i32_1 = arith.constant 0 : i32
    return %c0_i32, %c0_i32_0 : i32, i32
  }
  func.func @transform_6(%arg0: i32, %arg1: i32) -> (i32, i32) {
    %c0_i32 = arith.constant 0 : i32
    %c0_i32_0 = arith.constant 0 : i32
    %c0_i32_1 = arith.constant 0 : i32
    return %c0_i32, %c0_i32_0 : i32, i32
  }
  func.func @transform_7(%arg0: i32, %arg1: i32) -> (i32, i32) {
    %c0_i32 = arith.constant 0 : i32
    %c0_i32_0 = arith.constant 0 : i32
    %c0_i32_1 = arith.constant 0 : i32
    return %c0_i32, %c0_i32_0 : i32, i32
  }
  func.func @transform_8(%arg0: i32, %arg1: i32) -> (i32, i32) {
    %c0_i32 = arith.constant 0 : i32
    %c0_i32_0 = arith.constant 0 : i32
    %c0_i32_1 = arith.constant 0 : i32
    return %c0_i32, %c0_i32_0 : i32, i32
  }
  func.func @transform_9(%arg0: i32, %arg1: i32) -> (i32, i32) {
    %c0_i32 = arith.constant 0 : i32
    %c0_i32_0 = arith.constant 0 : i32
    %c0_i32_1 = arith.constant 0 : i32
    return %c0_i32, %c0_i32_0 : i32, i32
  }
  func.func @transform_10(%arg0: i32, %arg1: i32) -> (i32, i32) {
    %c0_i32 = arith.constant 0 : i32
    %c0_i32_0 = arith.constant 0 : i32
    %c0_i32_1 = arith.constant 0 : i32
    return %c0_i32, %c0_i32_0 : i32, i32
  }
  func.func @transform_11(%arg0: i32, %arg1: i32) -> (i32, i32) {
    %c0_i32 = arith.constant 0 : i32
    %c0_i32_0 = arith.constant 0 : i32
    %c0_i32_1 = arith.constant 0 : i32
    return %c0_i32, %c0_i32_0 : i32, i32
  }
  func.func @transform_12(%arg0: i32, %arg1: i32) -> (i32, i32) {
    %c0_i32 = arith.constant 0 : i32
    %c0_i32_0 = arith.constant 0 : i32
    %c0_i32_1 = arith.constant 0 : i32
    return %c0_i32, %c0_i32_0 : i32, i32
  }
  func.func @transform_13(%arg0: i32, %arg1: i32) -> (i32, i32, i32) {
    %c0_i32 = arith.constant 0 : i32
    %c0_i32_0 = arith.constant 0 : i32
    return %arg0, %arg1, %c0_i32 : i32, i32, i32
  }
}

module attributes {stable_mosaic.version = 11 : i64} {
  func.func @vit_encoder_kernel(%arg0: i32, %arg1: i32, %arg2: memref<1x8x32xf32, #tpu.memory_space<vmem>>, %arg3: memref<1x32xf32, #tpu.memory_space<vmem>>, %arg4: memref<1x32xf32, #tpu.memory_space<vmem>>, %arg5: memref<32x32xbf16, #tpu.memory_space<vmem>>, %arg6: memref<1x32xf32, #tpu.memory_space<vmem>>, %arg7: memref<32x64xbf16, #tpu.memory_space<vmem>>, %arg8: memref<1x64xf32, #tpu.memory_space<vmem>>, %arg9: memref<1x32xf32, #tpu.memory_space<vmem>>, %arg10: memref<1x32xf32, #tpu.memory_space<vmem>>, %arg11: memref<32x128xbf16, #tpu.memory_space<vmem>>, %arg12: memref<1x128xf32, #tpu.memory_space<vmem>>, %arg13: memref<128x32xbf16, #tpu.memory_space<vmem>>, %arg14: memref<1x32xf32, #tpu.memory_space<vmem>>, %arg15: memref<1x8x32xf32, #tpu.memory_space<vmem>>, %arg16: memref<8x32xbf16, #tpu.memory_space<vmem>>, %arg17: memref<8x64xbf16, #tpu.memory_space<vmem>>, %arg18: memref<8x32xf32, #tpu.memory_space<vmem>>) attributes {dimension_semantics = [#tpu.dimension_semantics<parallel>, #tpu.dimension_semantics<arbitrary>], iteration_bounds = array<i64: 2, 1>, scalar_prefetch = 0 : i64, scratch_operands = 3 : i64, tpu.core_type = #tpu.core_type<tc>, window_params = [{transform_indices = @transform_0, window_bounds = array<i64: 1, 8, 32>}, {pipeline_mode = #tpu.pipeline_mode<synchronous>, transform_indices = @transform_1, window_bounds = array<i64: 1, 32>}, {pipeline_mode = #tpu.pipeline_mode<synchronous>, transform_indices = @transform_2, window_bounds = array<i64: 1, 32>}, {pipeline_mode = #tpu.pipeline_mode<synchronous>, transform_indices = @transform_3, window_bounds = array<i64: 32, 32>}, {pipeline_mode = #tpu.pipeline_mode<synchronous>, transform_indices = @transform_4, window_bounds = array<i64: 1, 32>}, {pipeline_mode = #tpu.pipeline_mode<synchronous>, transform_indices = @transform_5, window_bounds = array<i64: 32, 64>}, {pipeline_mode = #tpu.pipeline_mode<synchronous>, transform_indices = @transform_6, window_bounds = array<i64: 1, 64>}, {pipeline_mode = #tpu.pipeline_mode<synchronous>, transform_indices = @transform_7, window_bounds = array<i64: 1, 32>}, {pipeline_mode = #tpu.pipeline_mode<synchronous>, transform_indices = @transform_8, window_bounds = array<i64: 1, 32>}, {pipeline_mode = #tpu.pipeline_mode<synchronous>, transform_indices = @transform_9, window_bounds = array<i64: 32, 128>}, {pipeline_mode = #tpu.pipeline_mode<synchronous>, transform_indices = @transform_10, window_bounds = array<i64: 1, 128>}, {pipeline_mode = #tpu.pipeline_mode<synchronous>, transform_indices = @transform_11, window_bounds = array<i64: 128, 32>}, {pipeline_mode = #tpu.pipeline_mode<synchronous>, transform_indices = @transform_12, window_bounds = array<i64: 1, 32>}, {transform_indices = @transform_13, window_bounds = array<i64: 1, 8, 32>}]} {
    %c0_i32 = arith.constant 0 : i32
    %0 = arith.cmpi eq, %arg1, %c0_i32 : i32
    %1 = arith.extui %0 : i1 to i32
    %c0_i32_0 = arith.constant 0 : i32
    %2 = arith.cmpi ne, %1, %c0_i32_0 : i32
    scf.if %2 {
      %c0_57 = arith.constant 0 : index
      %c0_58 = arith.constant 0 : index
      %c0_59 = arith.constant 0 : index
      %147 = vector.load %arg2[%c0_57, %c0_58, %c0_59] : memref<1x8x32xf32, #tpu.memory_space<vmem>>, vector<1x8x32xf32>
      %148 = vector.shape_cast %147 : vector<1x8x32xf32> to vector<8x32xf32>
      %c0_60 = arith.constant 0 : index
      %c0_61 = arith.constant 0 : index
      %149 = vector.load %arg3[%c0_60, %c0_61] : memref<1x32xf32, #tpu.memory_space<vmem>>, vector<1x32xf32>
      %c0_62 = arith.constant 0 : index
      %c0_63 = arith.constant 0 : index
      %150 = vector.load %arg4[%c0_62, %c0_63] : memref<1x32xf32, #tpu.memory_space<vmem>>, vector<1x32xf32>
      %cst_64 = arith.constant dense<0.000000e+00> : vector<8xf32>
      %151 = vector.multi_reduction <add>, %148, %cst_64 [1] : vector<8x32xf32> to vector<8xf32>
      %152 = vector.shape_cast %151 : vector<8xf32> to vector<8x1xf32>
      %cst_65 = arith.constant 3.200000e+01 : f32
      %153 = vector.broadcast %cst_65 : f32 to vector<8x1xf32>
      %154 = arith.divf %152, %153 : vector<8x1xf32>
      %155 = vector.broadcast %154 : vector<8x1xf32> to vector<8x32xf32>
      %156 = arith.subf %148, %155 : vector<8x32xf32>
      %157 = arith.mulf %156, %156 : vector<8x32xf32>
      %cst_66 = arith.constant dense<0.000000e+00> : vector<8xf32>
      %158 = vector.multi_reduction <add>, %157, %cst_66 [1] : vector<8x32xf32> to vector<8xf32>
      %159 = vector.shape_cast %158 : vector<8xf32> to vector<8x1xf32>
      %cst_67 = arith.constant 3.200000e+01 : f32
      %160 = vector.broadcast %cst_67 : f32 to vector<8x1xf32>
      %161 = arith.divf %159, %160 : vector<8x1xf32>
      %162 = vector.broadcast %154 : vector<8x1xf32> to vector<8x32xf32>
      %163 = arith.subf %148, %162 : vector<8x32xf32>
      %cst_68 = arith.constant 9.99999974E-6 : f32
      %164 = vector.broadcast %cst_68 : f32 to vector<8x1xf32>
      %165 = arith.addf %161, %164 : vector<8x1xf32>
      %166 = math.rsqrt %165 : vector<8x1xf32>
      %167 = vector.broadcast %166 : vector<8x1xf32> to vector<8x32xf32>
      %168 = arith.mulf %163, %167 : vector<8x32xf32>
      %169 = vector.broadcast %149 : vector<1x32xf32> to vector<8x32xf32>
      %170 = arith.mulf %168, %169 : vector<8x32xf32>
      %171 = vector.broadcast %150 : vector<1x32xf32> to vector<8x32xf32>
      %172 = arith.addf %170, %171 : vector<8x32xf32>
      %173 = arith.truncf %172 : vector<8x32xf32> to vector<8x32xbf16>
      %c0_69 = arith.constant 0 : index
      %c0_70 = arith.constant 0 : index
      %174 = vector.load %arg16[%c0_69, %c0_70] : memref<8x32xbf16, #tpu.memory_space<vmem>>, vector<8x32xbf16>
      tpu.vector_store %arg16[%c0_69, %c0_70], %173 {strides = array<i32>} : memref<8x32xbf16, #tpu.memory_space<vmem>>, vector<8x32xbf16>,
      %c0_71 = arith.constant 0 : index
      %c0_72 = arith.constant 0 : index
      %175 = vector.load %arg7[%c0_71, %c0_72] : memref<32x64xbf16, #tpu.memory_space<vmem>>, vector<32x64xbf16>
      %cst_73 = arith.constant dense<0.000000e+00> : vector<8x64xf32>
      %176 = tpu.matmul %173, %175, %cst_73 {dimension_numbers = #tpu.dot_dimension_numbers<[1], [0], [0], [1], [0, 0, 1, 1], [], []>} : vector<8x32xbf16>, vector<32x64xbf16>, vector<8x64xf32> -> vector<8x64xf32>
      %c0_74 = arith.constant 0 : index
      %c0_75 = arith.constant 0 : index
      %177 = vector.load %arg8[%c0_74, %c0_75] : memref<1x64xf32, #tpu.memory_space<vmem>>, vector<1x64xf32>
      %178 = vector.broadcast %177 : vector<1x64xf32> to vector<8x64xf32>
      %179 = arith.addf %176, %178 : vector<8x64xf32>
      %180 = arith.truncf %179 : vector<8x64xf32> to vector<8x64xbf16>
      %c0_76 = arith.constant 0 : index
      %c0_77 = arith.constant 0 : index
      %181 = vector.load %arg17[%c0_76, %c0_77] : memref<8x64xbf16, #tpu.memory_space<vmem>>, vector<8x64xbf16>
      tpu.vector_store %arg17[%c0_76, %c0_77], %180 {strides = array<i32>} : memref<8x64xbf16, #tpu.memory_space<vmem>>, vector<8x64xbf16>,
    } else {
    }
    %c8_i32 = arith.constant 8 : i32
    %3 = arith.muli %arg1, %c8_i32 : i32
    %4 = tpu.assume_multiple %3, 8 : i32
    %c0 = arith.constant 0 : index
    %5 = arith.index_cast %4 : i32 to index
    %c0_1 = arith.constant 0 : index
    %6 = vector.load %arg2[%c0, %5, %c0_1] : memref<1x8x32xf32, #tpu.memory_space<vmem>>, vector<1x8x32xf32>
    %7 = vector.shape_cast %6 : vector<1x8x32xf32> to vector<8x32xf32>
    %8 = arith.index_cast %4 : i32 to index
    %c0_2 = arith.constant 0 : index
    %9 = vector.load %arg16[%8, %c0_2] : memref<8x32xbf16, #tpu.memory_space<vmem>>, vector<8x32xbf16>
    %c0_3 = arith.constant 0 : index
    %c0_4 = arith.constant 0 : index
    %10 = vector.load %arg5[%c0_3, %c0_4] : memref<32x32xbf16, #tpu.memory_space<vmem>>, vector<32x32xbf16>
    %cst = arith.constant dense<0.000000e+00> : vector<8x32xf32>
    %11 = tpu.matmul %9, %10, %cst {dimension_numbers = #tpu.dot_dimension_numbers<[1], [0], [0], [1], [0, 0, 1, 1], [], []>} : vector<8x32xbf16>, vector<32x32xbf16>, vector<8x32xf32> -> vector<8x32xf32>
    %c0_5 = arith.constant 0 : index
    %c0_6 = arith.constant 0 : index
    %12 = vector.load %arg6[%c0_5, %c0_6] : memref<1x32xf32, #tpu.memory_space<vmem>>, vector<1x32xf32>
    %13 = vector.broadcast %12 : vector<1x32xf32> to vector<8x32xf32>
    %14 = arith.addf %11, %13 : vector<8x32xf32>
    %15 = arith.truncf %14 : vector<8x32xf32> to vector<8x32xbf16>
    %c0_7 = arith.constant 0 : index
    %c0_8 = arith.constant 0 : index
    %16 = vector.load %arg17[%c0_7, %c0_8] : memref<8x64xbf16, #tpu.memory_space<vmem>>, vector<8x64xbf16>
    %17 = vector.extract_strided_slice %16 {offsets = [0, 0], sizes = [8, 8], strides = [1, 1]} : vector<8x64xbf16> to vector<8x8xbf16>
    %18 = vector.extract_strided_slice %16 {offsets = [0, 32], sizes = [8, 8], strides = [1, 1]} : vector<8x64xbf16> to vector<8x8xbf16>
    %19 = vector.extract_strided_slice %15 {offsets = [0, 0], sizes = [8, 8], strides = [1, 1]} : vector<8x32xbf16> to vector<8x8xbf16>
    %cst_9 = arith.constant dense<0.000000e+00> : vector<8x8xf32>
    %20 = tpu.matmul %19, %17, %cst_9 {dimension_numbers = #tpu.dot_dimension_numbers<[1], [1], [0], [0], [0, 0, 1, 0], [], []>} : vector<8x8xbf16>, vector<8x8xbf16>, vector<8x8xf32> -> vector<8x8xf32>
    %cst_10 = arith.constant dense<0xFF800000> : vector<8xf32>
    %21 = vector.multi_reduction <maximumf>, %20, %cst_10 [1] : vector<8x8xf32> to vector<8xf32>
    %22 = vector.shape_cast %21 : vector<8xf32> to vector<8x1xf32>
    %23 = vector.broadcast %22 : vector<8x1xf32> to vector<8x8xf32>
    %24 = arith.subf %20, %23 : vector<8x8xf32>
    %25 = math.exp %24 : vector<8x8xf32>
    %cst_11 = arith.constant dense<0.000000e+00> : vector<8xf32>
    %26 = vector.multi_reduction <add>, %25, %cst_11 [1] : vector<8x8xf32> to vector<8xf32>
    %27 = vector.shape_cast %26 : vector<8xf32> to vector<8x1xf32>
    %28 = tpu.reciprocal %27 {approx = true} : vector<8x1xf32> -> vector<8x1xf32>
    %29 = vector.broadcast %28 : vector<8x1xf32> to vector<8x8xf32>
    %30 = arith.mulf %25, %29 : vector<8x8xf32>
    %31 = arith.truncf %30 : vector<8x8xf32> to vector<8x8xbf16>
    %cst_12 = arith.constant dense<0.000000e+00> : vector<8x8xf32>
    %32 = tpu.matmul %31, %18, %cst_12 {dimension_numbers = #tpu.dot_dimension_numbers<[1], [0], [0], [1], [0, 0, 1, 1], [], []>} : vector<8x8xbf16>, vector<8x8xbf16>, vector<8x8xf32> -> vector<8x8xf32>
    %c0_13 = arith.constant 0 : index
    %c0_14 = arith.constant 0 : index
    %33 = vector.load %arg18[%c0_13, %c0_14] : memref<8x32xf32, #tpu.memory_space<vmem>>, vector<8x8xf32>
    tpu.vector_store %arg18[%c0_13, %c0_14], %32 {strides = array<i32>} : memref<8x32xf32, #tpu.memory_space<vmem>>, vector<8x8xf32>,
    %34 = vector.extract_strided_slice %16 {offsets = [0, 8], sizes = [8, 8], strides = [1, 1]} : vector<8x64xbf16> to vector<8x8xbf16>
    %35 = vector.extract_strided_slice %16 {offsets = [0, 40], sizes = [8, 8], strides = [1, 1]} : vector<8x64xbf16> to vector<8x8xbf16>
    %36 = vector.extract_strided_slice %15 {offsets = [0, 8], sizes = [8, 8], strides = [1, 1]} : vector<8x32xbf16> to vector<8x8xbf16>
    %cst_15 = arith.constant dense<0.000000e+00> : vector<8x8xf32>
    %37 = tpu.matmul %36, %34, %cst_15 {dimension_numbers = #tpu.dot_dimension_numbers<[1], [1], [0], [0], [0, 0, 1, 0], [], []>} : vector<8x8xbf16>, vector<8x8xbf16>, vector<8x8xf32> -> vector<8x8xf32>
    %cst_16 = arith.constant dense<0xFF800000> : vector<8xf32>
    %38 = vector.multi_reduction <maximumf>, %37, %cst_16 [1] : vector<8x8xf32> to vector<8xf32>
    %39 = vector.shape_cast %38 : vector<8xf32> to vector<8x1xf32>
    %40 = vector.broadcast %39 : vector<8x1xf32> to vector<8x8xf32>
    %41 = arith.subf %37, %40 : vector<8x8xf32>
    %42 = math.exp %41 : vector<8x8xf32>
    %cst_17 = arith.constant dense<0.000000e+00> : vector<8xf32>
    %43 = vector.multi_reduction <add>, %42, %cst_17 [1] : vector<8x8xf32> to vector<8xf32>
    %44 = vector.shape_cast %43 : vector<8xf32> to vector<8x1xf32>
    %45 = tpu.reciprocal %44 {approx = true} : vector<8x1xf32> -> vector<8x1xf32>
    %46 = vector.broadcast %45 : vector<8x1xf32> to vector<8x8xf32>
    %47 = arith.mulf %42, %46 : vector<8x8xf32>
    %48 = arith.truncf %47 : vector<8x8xf32> to vector<8x8xbf16>
    %cst_18 = arith.constant dense<0.000000e+00> : vector<8x8xf32>
    %49 = tpu.matmul %48, %35, %cst_18 {dimension_numbers = #tpu.dot_dimension_numbers<[1], [0], [0], [1], [0, 0, 1, 1], [], []>} : vector<8x8xbf16>, vector<8x8xbf16>, vector<8x8xf32> -> vector<8x8xf32>
    %c0_19 = arith.constant 0 : index
    %c8 = arith.constant 8 : index
    %50 = vector.load %arg18[%c0_19, %c8] : memref<8x32xf32, #tpu.memory_space<vmem>>, vector<8x8xf32>
    tpu.vector_store %arg18[%c0_19, %c8], %49 {strides = array<i32>} : memref<8x32xf32, #tpu.memory_space<vmem>>, vector<8x8xf32>,
    %51 = vector.extract_strided_slice %16 {offsets = [0, 16], sizes = [8, 8], strides = [1, 1]} : vector<8x64xbf16> to vector<8x8xbf16>
    %52 = vector.extract_strided_slice %16 {offsets = [0, 48], sizes = [8, 8], strides = [1, 1]} : vector<8x64xbf16> to vector<8x8xbf16>
    %53 = vector.extract_strided_slice %15 {offsets = [0, 16], sizes = [8, 8], strides = [1, 1]} : vector<8x32xbf16> to vector<8x8xbf16>
    %cst_20 = arith.constant dense<0.000000e+00> : vector<8x8xf32>
    %54 = tpu.matmul %53, %51, %cst_20 {dimension_numbers = #tpu.dot_dimension_numbers<[1], [1], [0], [0], [0, 0, 1, 0], [], []>} : vector<8x8xbf16>, vector<8x8xbf16>, vector<8x8xf32> -> vector<8x8xf32>
    %cst_21 = arith.constant dense<0xFF800000> : vector<8xf32>
    %55 = vector.multi_reduction <maximumf>, %54, %cst_21 [1] : vector<8x8xf32> to vector<8xf32>
    %56 = vector.shape_cast %55 : vector<8xf32> to vector<8x1xf32>
    %57 = vector.broadcast %56 : vector<8x1xf32> to vector<8x8xf32>
    %58 = arith.subf %54, %57 : vector<8x8xf32>
    %59 = math.exp %58 : vector<8x8xf32>
    %cst_22 = arith.constant dense<0.000000e+00> : vector<8xf32>
    %60 = vector.multi_reduction <add>, %59, %cst_22 [1] : vector<8x8xf32> to vector<8xf32>
    %61 = vector.shape_cast %60 : vector<8xf32> to vector<8x1xf32>
    %62 = tpu.reciprocal %61 {approx = true} : vector<8x1xf32> -> vector<8x1xf32>
    %63 = vector.broadcast %62 : vector<8x1xf32> to vector<8x8xf32>
    %64 = arith.mulf %59, %63 : vector<8x8xf32>
    %65 = arith.truncf %64 : vector<8x8xf32> to vector<8x8xbf16>
    %cst_23 = arith.constant dense<0.000000e+00> : vector<8x8xf32>
    %66 = tpu.matmul %65, %52, %cst_23 {dimension_numbers = #tpu.dot_dimension_numbers<[1], [0], [0], [1], [0, 0, 1, 1], [], []>} : vector<8x8xbf16>, vector<8x8xbf16>, vector<8x8xf32> -> vector<8x8xf32>
    %c0_24 = arith.constant 0 : index
    %c16 = arith.constant 16 : index
    %67 = vector.load %arg18[%c0_24, %c16] : memref<8x32xf32, #tpu.memory_space<vmem>>, vector<8x8xf32>
    tpu.vector_store %arg18[%c0_24, %c16], %66 {strides = array<i32>} : memref<8x32xf32, #tpu.memory_space<vmem>>, vector<8x8xf32>,
    %68 = vector.extract_strided_slice %16 {offsets = [0, 24], sizes = [8, 8], strides = [1, 1]} : vector<8x64xbf16> to vector<8x8xbf16>
    %69 = vector.extract_strided_slice %16 {offsets = [0, 56], sizes = [8, 8], strides = [1, 1]} : vector<8x64xbf16> to vector<8x8xbf16>
    %70 = vector.extract_strided_slice %15 {offsets = [0, 24], sizes = [8, 8], strides = [1, 1]} : vector<8x32xbf16> to vector<8x8xbf16>
    %cst_25 = arith.constant dense<0.000000e+00> : vector<8x8xf32>
    %71 = tpu.matmul %70, %68, %cst_25 {dimension_numbers = #tpu.dot_dimension_numbers<[1], [1], [0], [0], [0, 0, 1, 0], [], []>} : vector<8x8xbf16>, vector<8x8xbf16>, vector<8x8xf32> -> vector<8x8xf32>
    %cst_26 = arith.constant dense<0xFF800000> : vector<8xf32>
    %72 = vector.multi_reduction <maximumf>, %71, %cst_26 [1] : vector<8x8xf32> to vector<8xf32>
    %73 = vector.shape_cast %72 : vector<8xf32> to vector<8x1xf32>
    %74 = vector.broadcast %73 : vector<8x1xf32> to vector<8x8xf32>
    %75 = arith.subf %71, %74 : vector<8x8xf32>
    %76 = math.exp %75 : vector<8x8xf32>
    %cst_27 = arith.constant dense<0.000000e+00> : vector<8xf32>
    %77 = vector.multi_reduction <add>, %76, %cst_27 [1] : vector<8x8xf32> to vector<8xf32>
    %78 = vector.shape_cast %77 : vector<8xf32> to vector<8x1xf32>
    %79 = tpu.reciprocal %78 {approx = true} : vector<8x1xf32> -> vector<8x1xf32>
    %80 = vector.broadcast %79 : vector<8x1xf32> to vector<8x8xf32>
    %81 = arith.mulf %76, %80 : vector<8x8xf32>
    %82 = arith.truncf %81 : vector<8x8xf32> to vector<8x8xbf16>
    %cst_28 = arith.constant dense<0.000000e+00> : vector<8x8xf32>
    %83 = tpu.matmul %82, %69, %cst_28 {dimension_numbers = #tpu.dot_dimension_numbers<[1], [0], [0], [1], [0, 0, 1, 1], [], []>} : vector<8x8xbf16>, vector<8x8xbf16>, vector<8x8xf32> -> vector<8x8xf32>
    %c0_29 = arith.constant 0 : index
    %c24 = arith.constant 24 : index
    %84 = vector.load %arg18[%c0_29, %c24] : memref<8x32xf32, #tpu.memory_space<vmem>>, vector<8x8xf32>
    tpu.vector_store %arg18[%c0_29, %c24], %83 {strides = array<i32>} : memref<8x32xf32, #tpu.memory_space<vmem>>, vector<8x8xf32>,
    %c0_30 = arith.constant 0 : index
    %c0_31 = arith.constant 0 : index
    %85 = vector.load %arg18[%c0_30, %c0_31] : memref<8x32xf32, #tpu.memory_space<vmem>>, vector<8x32xf32>
    %86 = arith.addf %7, %85 : vector<8x32xf32>
    %c0_32 = arith.constant 0 : index
    %c0_33 = arith.constant 0 : index
    %87 = vector.load %arg9[%c0_32, %c0_33] : memref<1x32xf32, #tpu.memory_space<vmem>>, vector<1x32xf32>
    %c0_34 = arith.constant 0 : index
    %c0_35 = arith.constant 0 : index
    %88 = vector.load %arg10[%c0_34, %c0_35] : memref<1x32xf32, #tpu.memory_space<vmem>>, vector<1x32xf32>
    %cst_36 = arith.constant dense<0.000000e+00> : vector<8xf32>
    %89 = vector.multi_reduction <add>, %86, %cst_36 [1] : vector<8x32xf32> to vector<8xf32>
    %90 = vector.shape_cast %89 : vector<8xf32> to vector<8x1xf32>
    %cst_37 = arith.constant 3.200000e+01 : f32
    %91 = vector.broadcast %cst_37 : f32 to vector<8x1xf32>
    %92 = arith.divf %90, %91 : vector<8x1xf32>
    %93 = vector.broadcast %92 : vector<8x1xf32> to vector<8x32xf32>
    %94 = arith.subf %86, %93 : vector<8x32xf32>
    %95 = arith.mulf %94, %94 : vector<8x32xf32>
    %cst_38 = arith.constant dense<0.000000e+00> : vector<8xf32>
    %96 = vector.multi_reduction <add>, %95, %cst_38 [1] : vector<8x32xf32> to vector<8xf32>
    %97 = vector.shape_cast %96 : vector<8xf32> to vector<8x1xf32>
    %cst_39 = arith.constant 3.200000e+01 : f32
    %98 = vector.broadcast %cst_39 : f32 to vector<8x1xf32>
    %99 = arith.divf %97, %98 : vector<8x1xf32>
    %100 = vector.broadcast %92 : vector<8x1xf32> to vector<8x32xf32>
    %101 = arith.subf %86, %100 : vector<8x32xf32>
    %cst_40 = arith.constant 9.99999974E-6 : f32
    %102 = vector.broadcast %cst_40 : f32 to vector<8x1xf32>
    %103 = arith.addf %99, %102 : vector<8x1xf32>
    %104 = math.rsqrt %103 : vector<8x1xf32>
    %105 = vector.broadcast %104 : vector<8x1xf32> to vector<8x32xf32>
    %106 = arith.mulf %101, %105 : vector<8x32xf32>
    %107 = vector.broadcast %87 : vector<1x32xf32> to vector<8x32xf32>
    %108 = arith.mulf %106, %107 : vector<8x32xf32>
    %109 = vector.broadcast %88 : vector<1x32xf32> to vector<8x32xf32>
    %110 = arith.addf %108, %109 : vector<8x32xf32>
    %111 = arith.truncf %110 : vector<8x32xf32> to vector<8x32xbf16>
    %cst_41 = arith.constant 0.000000e+00 : f32
    %112 = vector.broadcast %cst_41 : f32 to vector<8x32xf32>
    %c0_i32_42 = arith.constant 0 : i32
    %c128_i32 = arith.constant 128 : i32
    %113 = arith.muli %c0_i32_42, %c128_i32 : i32
    %114 = tpu.assume_multiple %113, 128 : i32
    %c0_43 = arith.constant 0 : index
    %115 = arith.index_cast %114 : i32 to index
    %116 = vector.load %arg11[%c0_43, %115] : memref<32x128xbf16, #tpu.memory_space<vmem>>, vector<32x128xbf16>
    %cst_44 = arith.constant dense<0.000000e+00> : vector<8x128xf32>
    %117 = tpu.matmul %111, %116, %cst_44 {dimension_numbers = #tpu.dot_dimension_numbers<[1], [0], [0], [1], [0, 0, 1, 1], [], []>} : vector<8x32xbf16>, vector<32x128xbf16>, vector<8x128xf32> -> vector<8x128xf32>
    %c0_45 = arith.constant 0 : index
    %118 = arith.index_cast %114 : i32 to index
    %119 = vector.load %arg12[%c0_45, %118] : memref<1x128xf32, #tpu.memory_space<vmem>>, vector<1x128xf32>
    %120 = vector.broadcast %119 : vector<1x128xf32> to vector<8x128xf32>
    %121 = arith.addf %117, %120 : vector<8x128xf32>
    %122 = arith.mulf %121, %121 : vector<8x128xf32>
    %123 = arith.mulf %121, %122 : vector<8x128xf32>
    %cst_46 = arith.constant 4.471500e-02 : f32
    %124 = vector.broadcast %cst_46 : f32 to vector<8x128xf32>
    %125 = arith.mulf %124, %123 : vector<8x128xf32>
    %126 = arith.addf %121, %125 : vector<8x128xf32>
    %cst_47 = arith.constant 0.797884583 : f32
    %127 = vector.broadcast %cst_47 : f32 to vector<8x128xf32>
    %128 = arith.mulf %127, %126 : vector<8x128xf32>
    %129 = math.tanh %128 : vector<8x128xf32>
    %cst_48 = arith.constant 1.000000e+00 : f32
    %130 = vector.broadcast %cst_48 : f32 to vector<8x128xf32>
    %131 = arith.addf %130, %129 : vector<8x128xf32>
    %cst_49 = arith.constant 5.000000e-01 : f32
    %132 = vector.broadcast %cst_49 : f32 to vector<8x128xf32>
    %133 = arith.mulf %132, %131 : vector<8x128xf32>
    %134 = arith.mulf %121, %133 : vector<8x128xf32>
    %135 = arith.truncf %134 : vector<8x128xf32> to vector<8x128xbf16>
    %136 = arith.index_cast %114 : i32 to index
    %c0_50 = arith.constant 0 : index
    %137 = vector.load %arg13[%136, %c0_50] : memref<128x32xbf16, #tpu.memory_space<vmem>>, vector<128x32xbf16>
    %cst_51 = arith.constant dense<0.000000e+00> : vector<8x32xf32>
    %138 = tpu.matmul %135, %137, %cst_51 {dimension_numbers = #tpu.dot_dimension_numbers<[1], [0], [0], [1], [0, 0, 1, 1], [], []>} : vector<8x128xbf16>, vector<128x32xbf16>, vector<8x32xf32> -> vector<8x32xf32>
    %139 = arith.addf %112, %138 : vector<8x32xf32>
    %c1_i32 = arith.constant 1 : i32
    %c0_52 = arith.constant 0 : index
    %c0_53 = arith.constant 0 : index
    %140 = vector.load %arg14[%c0_52, %c0_53] : memref<1x32xf32, #tpu.memory_space<vmem>>, vector<1x32xf32>
    %141 = vector.broadcast %140 : vector<1x32xf32> to vector<8x32xf32>
    %142 = arith.addf %139, %141 : vector<8x32xf32>
    %143 = arith.addf %86, %142 : vector<8x32xf32>
    %c0_54 = arith.constant 0 : index
    %c0_55 = arith.constant 0 : index
    %c0_56 = arith.constant 0 : index
    %144 = vector.load %arg15[%c0_54, %c0_55, %c0_56] : memref<1x8x32xf32, #tpu.memory_space<vmem>>, vector<1x8x32xf32>
    %145 = vector.shape_cast %144 : vector<1x8x32xf32> to vector<8x32xf32>
    %146 = vector.shape_cast %143 : vector<8x32xf32> to vector<1x8x32xf32>
    tpu.vector_store %arg15[%c0_54, %c0_55, %c0_56], %146 {strides = array<i32>} : memref<1x8x32xf32, #tpu.memory_space<vmem>>, vector<1x8x32xf32>,
    return
  }
  func.func @transform_0(%arg0: i32, %arg1: i32) -> (i32, i32, i32) {
    %c0_i32 = arith.constant 0 : i32
    %c0_i32_0 = arith.constant 0 : i32
    %c0_i32_1 = arith.constant 0 : i32
    return %arg0, %c0_i32, %c0_i32_0 : i32, i32, i32
  }
  func.func @transform_1(%arg0: i32, %arg1: i32) -> (i32, i32) {
    %c0_i32 = arith.constant 0 : i32
    %c0_i32_0 = arith.constant 0 : i32
    %c0_i32_1 = arith.constant 0 : i32
    return %c0_i32, %c0_i32_0 : i32, i32
  }
  func.func @transform_2(%arg0: i32, %arg1: i32) -> (i32, i32) {
    %c0_i32 = arith.constant 0 : i32
    %c0_i32_0 = arith.constant 0 : i32
    %c0_i32_1 = arith.constant 0 : i32
    return %c0_i32, %c0_i32_0 : i32, i32
  }
  func.func @transform_3(%arg0: i32, %arg1: i32) -> (i32, i32) {
    %c0_i32 = arith.constant 0 : i32
    %c0_i32_0 = arith.constant 0 : i32
    %c0_i32_1 = arith.constant 0 : i32
    return %c0_i32, %c0_i32_0 : i32, i32
  }
  func.func @transform_4(%arg0: i32, %arg1: i32) -> (i32, i32) {
    %c0_i32 = arith.constant 0 : i32
    %c0_i32_0 = arith.constant 0 : i32
    %c0_i32_1 = arith.constant 0 : i32
    return %c0_i32, %c0_i32_0 : i32, i32
  }
  func.func @transform_5(%arg0: i32, %arg1: i32) -> (i32, i32) {
    %c0_i32 = arith.constant 0 : i32
    %c0_i32_0 = arith.constant 0 : i32
    %c0_i32_1 = arith.constant 0 : i32
    return %c0_i32, %c0_i32_0 : i32, i32
  }
  func.func @transform_6(%arg0: i32, %arg1: i32) -> (i32, i32) {
    %c0_i32 = arith.constant 0 : i32
    %c0_i32_0 = arith.constant 0 : i32
    %c0_i32_1 = arith.constant 0 : i32
    return %c0_i32, %c0_i32_0 : i32, i32
  }
  func.func @transform_7(%arg0: i32, %arg1: i32) -> (i32, i32) {
    %c0_i32 = arith.constant 0 : i32
    %c0_i32_0 = arith.constant 0 : i32
    %c0_i32_1 = arith.constant 0 : i32
    return %c0_i32, %c0_i32_0 : i32, i32
  }
  func.func @transform_8(%arg0: i32, %arg1: i32) -> (i32, i32) {
    %c0_i32 = arith.constant 0 : i32
    %c0_i32_0 = arith.constant 0 : i32
    %c0_i32_1 = arith.constant 0 : i32
    return %c0_i32, %c0_i32_0 : i32, i32
  }
  func.func @transform_9(%arg0: i32, %arg1: i32) -> (i32, i32) {
    %c0_i32 = arith.constant 0 : i32
    %c0_i32_0 = arith.constant 0 : i32
    %c0_i32_1 = arith.constant 0 : i32
    return %c0_i32, %c0_i32_0 : i32, i32
  }
  func.func @transform_10(%arg0: i32, %arg1: i32) -> (i32, i32) {
    %c0_i32 = arith.constant 0 : i32
    %c0_i32_0 = arith.constant 0 : i32
    %c0_i32_1 = arith.constant 0 : i32
    return %c0_i32, %c0_i32_0 : i32, i32
  }
  func.func @transform_11(%arg0: i32, %arg1: i32) -> (i32, i32) {
    %c0_i32 = arith.constant 0 : i32
    %c0_i32_0 = arith.constant 0 : i32
    %c0_i32_1 = arith.constant 0 : i32
    return %c0_i32, %c0_i32_0 : i32, i32
  }
  func.func @transform_12(%arg0: i32, %arg1: i32) -> (i32, i32) {
    %c0_i32 = arith.constant 0 : i32
    %c0_i32_0 = arith.constant 0 : i32
    %c0_i32_1 = arith.constant 0 : i32
    return %c0_i32, %c0_i32_0 : i32, i32
  }
  func.func @transform_13(%arg0: i32, %arg1: i32) -> (i32, i32, i32) {
    %c0_i32 = arith.constant 0 : i32
    %c0_i32_0 = arith.constant 0 : i32
    return %arg0, %arg1, %c0_i32 : i32, i32, i32
  }
}

</mosaic_0001>

<bundles_post_ra>
// kernel: tpu_custom_call.1
= control target key start
LH: loop header
LB: loop body
LE: loop exit
PB: predicated region body
PF: predicated region fallthrough
CT: control target
= control target key end

     0   :  { %s2120_s0 = inlined_call_operand.vmem [shape: f32[2,8,32], index: 0, kind: input, shape index: {}]   ;;  %s2121_s1 = inlined_call_operand.vmem [shape: f32[1,32], index: 1, kind: input, shape index: {}]   ;;  %s2122_s2 = inlined_call_operand.vmem [shape: f32[1,32], index: 2, kind: input, shape index: {}]   ;;  %s2123_s3 = inlined_call_operand.vmem [shape: bf16[32,32], index: 3, kind: input, shape index: {}]   ;;  %s2124_s4 = inlined_call_operand.vmem [shape: f32[1,32], index: 4, kind: input, shape index: {}]   ;;  %s2125_s5 = inlined_call_operand.vmem [shape: bf16[32,64], index: 5, kind: input, shape index: {}]   ;;  %s2126_s6 = inlined_call_operand.vmem [shape: f32[1,64], index: 6, kind: input, shape index: {}]   ;;  %s2127_s7 = inlined_call_operand.vmem [shape: f32[1,32], index: 7, kind: input, shape index: {}]   ;;  %s2128_s8 = inlined_call_operand.vmem [shape: f32[1,32], index: 8, kind: input, shape index: {}]   ;;  %s2129_s9 = inlined_call_operand.vmem [shape: bf16[32,128], index: 9, kind: input, shape index: {}]   ;;  %s2130_s10 = inlined_call_operand.vmem [shape: f32[1,128], index: 10, kind: input, shape index: {}]   ;;  %s2131_s11 = inlined_call_operand.vmem [shape: bf16[128,32], index: 11, kind: input, shape index: {}]   ;;  %s2132_s12 = inlined_call_operand.vmem [shape: f32[1,32], index: 12, kind: input, shape index: {}]   ;;  %s2133_s13 = inlined_call_operand.hbm [shape: f32[2,8,32], index: 13, kind: output, shape index: {}]  }
   0x1   :  { %2134 = sst [smem:[#allocation8_spill]] %s2120_s0 }
   0x2   :  { %2135 = sst [smem:[#allocation9_spill]] %s2121_s1 }
   0x3   :  { %2136 = sst [smem:[#allocation10_spill]] %s2122_s2 }
   0x4   :  { %2137 = sst [smem:[#allocation11_spill]] %s2123_s3 }
   0x5   :  { %18 = vsyncpa [#allocation6], 0 }
   0x6   :  { %20 = vsyncpa [#allocation6 + $0x1], 0  ;;  %s1844_s25 = smov 0   ;;  %s1846_s26 = smov 0  }
   0x7   :  { %s1848_s27 = smov 0   ;;  %s1850_s28 = smov 0  }
   0x8   :  { %s1852_s29 = smov 0   ;;  %s1854_s30 = smov 0  }
   0x9 LB: > { %s1406_s14 = sadd.s32 4294967295, %s1759_s30   ;;  %s1407_s15 = sadd.s32 4294967294, %s1759_s30   ;;  %s1759_s30 = sphi %s1854_s30, %s26_s30   ;;  %s1755_s29 = sphi %s1852_s29, %s2148_s29   ;;  %s1751_s28 = sphi %s1850_s28, %s2147_s28   ;;  %s1747_s27 = sphi %s1848_s27, %s2146_s27   ;;  %s1743_s26 = sphi %s1846_s26, %s2145_s26   ;;  %s1739_s25 = sphi %s1844_s25, %s2144_s25  }
   0xa   : > { %s38_s16 = sadd.s32 1, %s1755_s29  ;;  %s325_s17 = sadd.s32 1, %s1747_s27 }
   0xb   : > { %p40_p0 = scmp.ge.s32.totalorder %s38_s16, 2  ;;  %p335_p1 = scmp.ne.s32.totalorder %s1747_s27, %s1743_s26 }
   0xc   : > { %p336_p2 = scmp.eq.s32.totalorder %s1406_s14, 1  ;;  %p341_p3 = scmp.ne.s32.totalorder %s1743_s26, %s1739_s25 }
   0xd   : > { %s2150_s16 = smov (%p40_p0, %s38_s16), 0  ;;  %p342_p5 = scmp.eq.s32.totalorder %s1407_s15, 1 }
   0xe   : > { %p1884_p4 = por %p336_p2, %p335_p1  ;;  %s320_s19 = ssub.s32 %s1755_s29, %s2150_s16 }
   0xf   : > { %p1410_p6 = scmp.ge.s32.totalorder %s1759_s30, 1  ;;  %p323_p7 = scmp.eq.s32.totalorder %s320_s19, 0 }
  0x10   : > { %p1891_p8 = por %p342_p5, %p341_p3  ;;  %p403_p9 = scmp.lt.s32.totalorder %s1759_s30, 3 }
  0x11   : > { %s1897_s21 = scalar_select %p323_p7, %s1747_s27, %s325_s17  }
  0x12   : > { %p404_p10 = pnand %p1410_p6, %p403_p9 }
  0x13   : > { %p446_p11 = scmp.lt.s32.totalorder (!%p404_p10), %s1751_s28, 1  ;;  %vm458_vm0 = vcmask (!%p404_p10), 261120   ;;  %s2140_s0 = sld [smem:[#allocation8_spill]] (!%p404_p10)  ;;  %v1644_v7 = vld [vmem:[%s2125_s5] sm:$0xff] (!%p404_p10)   ;;  %v1761_v8 = vmov (!%p404_p10), 0.0   ;;  %vm1762_vm1 = vmmov (!%p404_p10), 0  }
  0x14   : > { %407 = sbr.rel (%p404_p10) target bundleno = 2403 (0x963), region = 72  ;;  %1485 = vmatprep.subr.bf16.mxu0 (!%p404_p10), %v1761_v8  ;;  %1489 = vmatprep.mubr.msk.bf16.mxu0 (!%p404_p10), %vm1762_vm1, %v1761_v8  ;;  %v1645_v9 = vld [vmem:[%s2125_s5 + $0x8] sm:$0xff] (!%p404_p10)   ;;  %s2141_s1 = sld [smem:[#allocation9_spill]] (!%p404_p10)  ;;  %vm488_vm2 = vcmask (!%p404_p10), 257024   ;;  %v1415_v23 = vld [vmem:[%s2126_s6] ss:$0 sm:$0xff] (!%p404_p10) }
  0x15   : > { %1486 = vmatpush3.bf16.msra.mxu0 (!%p404_p10), %v1644_v7  ;;  %1507 = vmatprep.subr.bf16.mxu1 (!%p404_p10), %v1761_v8  ;;  %s2142_s2 = sld [smem:[#allocation10_spill]] (!%p404_p10)  ;;  %s2143_s3 = sld [smem:[#allocation11_spill]] (!%p404_p10)  ;;  %vm557_vm3 = vcmask (!%p404_p10), 519168   ;;  %v1419_v32 = vld [vmem:[%s2124_s4] ss:$0 sm:$0xff] (!%p404_p10)  ;;  %vm636_vm4 = vcmask (!%p404_p10), 64512  }
  0x16   : > { %1487 = vmatprep.subr.bf16.mxu0 (!%p404_p10), %v1761_v8  ;;  %1509 = vmatprep.mubr.msk.bf16.mxu1 (!%p404_p10), %vm1762_vm1, %v1761_v8  ;;  %s1765_s24 = smov (!%p404_p10), 104   ;;  %s1766_s14 = smov (!%p404_p10), 88   ;;  %vm703_vm5 = vcmask (!%p404_p10), 1043456   ;;  %vm863_vm6 = vcmask (!%p404_p10), 130112   ;;  %vm979_vm7 = vcmask (!%p404_p10), 195712   ;;  %vm1095_vm8 = vcmask (!%p404_p10), 261312  }
  0x17   : > { %s1768_s17 = smov (!%p404_p10), 72   ;;  %s1769_s19 = smov (!%p404_p10), 80  }
  0x19   : > { %1488 = vmatpush3.bf16.msra.mxu0 (!%p404_p10), %v1645_v9 }
  0x1a   : > { %1493 = vmatprep.subr.bf16.mxu0 (!%p404_p10), %v1761_v8  ;;  %v1413_v14 = vld [vmem:[%s2141_s1] ss:$0 sm:$0xff] (!%p404_p10) }
  0x1b   : > { %s447_s22 = scalar_select %p446_p11, %s1751_s28, 1  ;;  %v1414_v16 = vld [vmem:[%s2142_s2] ss:$0 sm:$0xff]  ;;  %v1647_v21 = vld [vmem:[%s2143_s3 + $0x8] sm:$0xff]  }
  0x1c   : > { %v1646_v19 = vld [vmem:[%s2143_s3] sm:$0xff]  }
  0x1d   : > { %s1412_s23 = sshll.u32 %s447_s22, 3  ;;  %s1763_s22 = smov 112  }
  0x1e   : > { %s449_s15 = scalar_lea.vmem %s2140_s0, %s1412_s23  ;;  %s1764_s23 = smov 120  }
  0x1f   : > { %v1904_v0 = vld [vmem:[%s449_s15] sm:$0xff]  ;;  %s1767_s15 = smov 96  }
  0x20   : > { %v459_v1 = vsel %vm458_vm0, %v1904_v0, 0.0 }
  0x21   : > { %460 = vadd.xlane.f32.xlu0 %v459_v1 }
  0xae   : > { %v461_v2 = vpop.xlane.xlu0 %460 }
  0xaf   : > { %v463_v3 = vmul.f32 0.03125, %v461_v2 }
  0xb1   : > { %v464_v4 = vsub.f32 %v1904_v0, %v463_v3 }
  0xb3   : > { %v465_v5 = vmul.f32 %v464_v4, %v464_v4 }
  0xb5   : > { %v466_v6 = vsel %vm458_vm0, %v465_v5, 0.0 }
  0xb6   : > { %467 = vadd.xlane.f32.xlu0 %v466_v6 }
 0x143   : > { %v468_v10 = vpop.xlane.xlu0 %467 }
 0x144   : > { %v469_v11 = vmul.f32 0.03125, %v468_v10 }
 0x146   : > { %v470_v12 = vadd.f32 1e-05, %v469_v11 }
 0x148   : > { %1659 = vrsqrt.f32 %v470_v12 }
 0x152   : > { %v1660_v13 = vpop.eup %1659 }
 0x153   : > { %v472_v15 = vmul.f32 %v1660_v13, %v464_v4 }
 0x155   : > { %v479_v17 = vmul.f32 %v1413_v14, %v472_v15 }
 0x157   : > { %v486_v18 = vadd.f32 %v1414_v16, %v479_v17 }
 0x159   : > { %v487_v20 = vpack.c.bf16 %v486_v18, %v486_v18 }
 0x15b   : > { %489 = vst.msk [vmem:[#allocation2] sm:$0xf] %vm488_vm2, %v487_v20  ;;  %1490 = vmatmul.mubr.msk.bf16.vlgmr.msra.gmra.mrb[0].mxu0 %vm458_vm0, %v487_v20 }
 0x15c   : > { %1494 = vmatpush3.bf16.msra.mxu0 %v1646_v19  ;;  %1497 = vmatprep.mubr.msk.bf16.mxu0 %vm1762_vm1, %v1761_v8 }
 0x15d   : > { %1495 = vmatprep.subr.bf16.mxu0 %v1761_v8 }
 0x160   : > { %1496 = vmatpush3.bf16.msra.mxu0 %v1647_v21 }
 0x161   : > { %1501 = vmatprep.subr.bf16.mxu0 %v1761_v8 }
 0x162   : > { %v566_v22 = vld [vmem:[#allocation2] sm:$0xf] }
 0x163   : > { %1498 = vmatmul.mubr.msk.bf16.vlgmr.msra.gmra.mrb[4].mxu0 %vm458_vm0, %v566_v22 }
 0x164   : > { %1503 = vmatprep.mubr.msk.bf16.mxu0 %vm1762_vm1, %v1761_v8 }
 0x22e   : > { %v550_v24 = vpop.f32.mrb[0].mxu0 }
 0x22f   : > { %v551_v25 = vadd.f32 %v1415_v23, %v550_v24  ;;  %v1491_v26 = vpop.f32.mrb[1].mxu0 }
 0x230   : > { %v553_v27 = vpop.f32.mrb[2].mxu0 }
 0x231   : > { %v556_v28 = vpack.c.bf16 %v551_v25, %v551_v25  ;;  %v1492_v29 = vpop.f32.mrb[3].mxu0 }
 0x233   : > { %558 = vst.msk [vmem:[#allocation3] sm:$0xf] %vm557_vm3, %v556_v28 }
 0x236   : > { %v628_v30 = vpop.f32.mrb[4].mxu0 }
 0x237   : > { %v1499_v31 = vpop.f32.mrb[5].mxu0  ;;  %v629_v36 = vadd.f32 %v1419_v32, %v628_v30 }
 0x238   : > { %v631_v33 = vpop.f32.mrb[6].mxu0 }
 0x239   : > { %v1500_v34 = vpop.f32.mrb[7].mxu0  ;;  %v634_v39 = vpack.c.bf16 %v629_v36, %v629_v36 }
 0x23a   : > { %v635_v35 = vld [vmem:[#allocation3] sm:$0xf] }
 0x23b   : > { %v641_v37 = vsel %vm636_vm4, %v635_v35, 0  ;;  %v1951_v38 = vcombine.low %v635_v35, %v635_v35 }
 0x23c   : > { %1502 = vmatpush3.bf16.xpose.msra.mxu0 %v641_v37 }
 0x23d   : > { %867 = vrot.lane.b32.xlu0 %v1951_v38, %s1763_s22  ;;  %751 = vrot.lane.b32.xlu1 %v1951_v38, %s1764_s23 }
 0x23e   : > { %1513 = vmatprep.subr.bf16.mxu0 %v1761_v8 }
 0x241   : > { %749 = vrot.lane.b32.xlu1 %v634_v39, %s1764_s23  ;;  %s1771_s23 = smov 16  }
 0x243   : > { %1504 = vmatmul.mubr.msk.bf16.vlgmr.msra.gmra.mrb[8].mxu0 %vm636_vm4, %v634_v39 }
 0x244   : > { %1515 = vmatprep.mubr.msk.bf16.mxu0 %vm1762_vm1, %v1761_v8 }
 0x245   : > { %865 = vrot.lane.b32.xlu1 %v634_v39, %s1763_s22  ;;  %s1770_s22 = smov 8  }
 0x249   : > { %983 = vrot.lane.b32.xlu1 %v1951_v38, %s1765_s24 }
 0x24d   : > { %981 = vrot.lane.b32.xlu1 %v634_v39, %s1765_s24  ;;  %s1772_s24 = smov 24  }
 0x2af   : > { %v752_v40 = vpop.permute.xlu1 %751  ;;  %v868_v43 = vpop.permute.xlu0 %867 }
 0x2b0   : > { %v757_v41 = vsel %vm636_vm4, %v752_v40, 0  ;;  %v873_v45 = vsel %vm636_vm4, %v868_v43, 0 }
 0x2b1   : > { %1514 = vmatpush3.bf16.xpose.msra.mxu0 %v757_v41 }
 0x2b2   : > { %1525 = vmatprep.subr.bf16.mxu0 %v1761_v8 }
 0x2b3   : > { %v750_v42 = vpop.permute.xlu1 %749 }
 0x2b7   : > { %v866_v44 = vpop.permute.xlu1 %865 }
 0x2b8   : > { %1516 = vmatmul.mubr.msk.bf16.vlgmr.msra.gmra.mrb[12].mxu0 %vm636_vm4, %v750_v42 }
 0x2b9   : > { %1526 = vmatpush3.bf16.xpose.msra.mxu0 %v873_v45  ;;  %1527 = vmatprep.mubr.msk.bf16.mxu0 %vm1762_vm1, %v1761_v8 }
 0x2ba   : > { %1537 = vmatprep.subr.bf16.mxu0 %v1761_v8 }
 0x2bb   : > { %v984_v46 = vpop.permute.xlu1 %983 }
 0x2bc   : > { %v989_v47 = vsel %vm636_vm4, %v984_v46, 0 }
 0x2bf   : > { %v982_v48 = vpop.permute.xlu1 %981 }
 0x2c0   : > { %1528 = vmatmul.mubr.msk.bf16.vlgmr.msra.gmra.mrb[16].mxu0 %vm636_vm4, %v866_v44 }
 0x2c1   : > { %1538 = vmatpush3.bf16.xpose.msra.mxu0 %v989_v47  ;;  %1539 = vmatprep.mubr.msk.bf16.mxu0 %vm1762_vm1, %v1761_v8 }
 0x2c2   : > { %1549 = vmatprep.subr.bf16.mxu0 %v1761_v8 }
 0x2c8   : > { %1540 = vmatmul.mubr.msk.bf16.vlgmr.msra.gmra.mrb[20].mxu0 %vm636_vm4, %v982_v48 }
 0x2c9   : > { %1553 = vmatprep.mubr.msk.bf16.mxu0 %vm1762_vm1, %v1761_v8 }
 0x316   : > { %v677_v49 = vpop.f32.mrb[8].mxu0 }
 0x317   : > { %v1505_v50 = vpop.f32.mrb[9].mxu0  ;;  %v683_v51 = vsel %vm636_vm4, %v677_v49, -inf }
 0x318   : > { %684 = vmax.xlane.f32.xlu1 %v683_v51  ;;  %v680_v52 = vpop.f32.mrb[10].mxu0 }
 0x319   : > { %v1506_v53 = vpop.f32.mrb[11].mxu0 }
 0x38b   : > { %v793_v54 = vpop.f32.mrb[12].mxu0 }
 0x38c   : > { %v1517_v55 = vpop.f32.mrb[13].mxu0  ;;  %v799_v56 = vsel %vm636_vm4, %v793_v54, -inf }
 0x38d   : > { %800 = vmax.xlane.f32.xlu0 %v799_v56  ;;  %v796_v57 = vpop.f32.mrb[14].mxu0 }
 0x38e   : > { %v1518_v58 = vpop.f32.mrb[15].mxu0 }
 0x393   : > { %v909_v59 = vpop.f32.mrb[16].mxu0 }
 0x394   : > { %v1529_v60 = vpop.f32.mrb[17].mxu0  ;;  %v915_v61 = vsel %vm636_vm4, %v909_v59, -inf }
 0x395   : > { %916 = vmax.xlane.f32.xlu1 %v915_v61  ;;  %v912_v62 = vpop.f32.mrb[18].mxu0 }
 0x396   : > { %v1530_v63 = vpop.f32.mrb[19].mxu0 }
 0x39b   : > { %v1025_v1 = vpop.f32.mrb[20].mxu0 }
 0x39c   : > { %v1541_v2 = vpop.f32.mrb[21].mxu0  ;;  %v1031_v3 = vsel %vm636_vm4, %v1025_v1, -inf }
 0x39d   : > { %1032 = vmax.xlane.f32.xlu1 %v1031_v3  ;;  %v1028_v4 = vpop.f32.mrb[22].mxu0 }
 0x39e   : > { %v1542_v5 = vpop.f32.mrb[23].mxu0 }
 0x3a5   : > { %v685_v6 = vpop.xlane.xlu1 %684 }
 0x3a6   : > { %v686_v7 = vsub.f32 %v677_v49, %v685_v6 }
 0x3a8   : > { %v687_v9 = vmul.f32 1.442695, %v686_v7 }
 0x3aa   : > { %1661 = vpow2.f32 %v687_v9 }
 0x3b4   : > { %v1662_v10 = vpop.eup %1661 }
 0x3b5   : > { %v689_v11 = vsel %vm636_vm4, %v1662_v10, 0.0 }
 0x3b6   : > { %690 = vadd.xlane.f32.xlu0 %v689_v11 }
 0x41a   : > { %v801_v12 = vpop.xlane.xlu0 %800 }
 0x41b   : > { %v802_v13 = vsub.f32 %v793_v54, %v801_v12 }
 0x41d   : > { %v803_v14 = vmul.f32 1.442695, %v802_v13 }
 0x41f   : > { %1663 = vpow2.f32 %v803_v14 }
 0x422   : > { %v917_v15 = vpop.xlane.xlu1 %916 }
 0x423   : > { %v918_v16 = vsub.f32 %v909_v59, %v917_v15 }
 0x425   : > { %v919_v17 = vmul.f32 1.442695, %v918_v16  ;;  %v1649_v16 = vld [vmem:[%s2129_s9] sm:$0xff]  }
 0x426   : > { %1550 = vmatpush3.bf16.msra.mxu0 %v1649_v16 }
 0x427   : > { %1665 = vpow2.f32 %v919_v17  ;;  %1551 = vmatprep.subr.bf16.mxu0 %v1761_v8 }
 0x429   : > { %v1664_v18 = vpop.eup %1663 }
 0x42a   : > { %v805_v19 = vsel %vm636_vm4, %v1664_v18, 0.0  ;;  %v1033_v22 = vpop.xlane.xlu1 %1032 }
 0x42b   : > { %806 = vadd.xlane.f32.xlu1 %v805_v19  ;;  %v1034_v23 = vsub.f32 %v1025_v1, %v1033_v22 }
 0x42d   : > { %v1035_v24 = vmul.f32 1.442695, %v1034_v23  ;;  %v1433_v23 = vld [vmem:[%s2128_s8] ss:$0 sm:$0xff] }
 0x42f   : > { %1667 = vpow2.f32 %v1035_v24 }
 0x431   : > { %v1666_v20 = vpop.eup %1665 }
 0x432   : > { %v921_v21 = vsel %vm636_vm4, %v1666_v20, 0.0 }
 0x433   : > { %922 = vadd.xlane.f32.xlu0 %v921_v21  ;;  %v1432_v21 = vld [vmem:[%s2127_s7] ss:$0 sm:$0xff] }
 0x439   : > { %v1668_v25 = vpop.eup %1667 }
 0x43a   : > { %v1037_v26 = vsel %vm636_vm4, %v1668_v25, 0.0 }
 0x43c   : > { %811 = vrot.lane.b32.xlu1 %v1951_v38, %s1766_s14  ;;  %s1448_s14 = sshll.u32 %s1751_s28, 7 }
 0x43d   : > { %s2072_s2 = scalar_lea.hbm %s2133_s13, %s1448_s14 }
 0x443   : > { %v691_v27 = vpop.xlane.xlu0 %690 }
 0x444   : > { %1669 = vrcp.f32 %v691_v27  ;;  %v1651_v27 = vld [vmem:[%s2131_s11] sm:$0xff]  }
 0x449   : > { %698 = vrot.lane.b32.xlu0 %v1951_v38, %s1767_s15 }
 0x44d   : > { %1043 = vrot.lane.b32.xlu0 %v1951_v38, %s1768_s17 }
 0x44e   : > { %v1670_v29 = vpop.eup %1669 }
 0x44f   : > { %v693_v31 = vmul.f32 %v1670_v29, %v1662_v10  ;;  %v1653_v29 = vld [vmem:[%s2131_s11 + $0x10] sm:$0xff]  }
 0x451   : > { %v694_v35 = vpack.c.bf16 %v693_v31, %v693_v31  ;;  %v1655_v31 = vld [vmem:[%s2131_s11 + $0x20] sm:$0xff]  }
 0x460   : > { %1038 = vadd.xlane.f32.xlu1 %v1037_v26 }
 0x471   : > { %927 = vrot.lane.b32.xlu1 %v1951_v38, %s1769_s19  ;;  %s443_s19 = sand.u32 1, %s1743_s26  }
 0x472   : > { %s1320_s28 = scalar_lea.sflag [#allocation6], %s443_s19 }
 0x4b8   : > { %v807_v28 = vpop.xlane.xlu1 %806 }
 0x4b9   : > { %1671 = vrcp.f32 %v807_v28  ;;  %v1652_v28 = vld [vmem:[%s2131_s11 + $0x8] sm:$0xff]  }
 0x4bc   : > { %v812_v34 = vpop.permute.xlu1 %811 }
 0x4bd   : > { %v817_v37 = vsel %vm703_vm5, %v812_v34, 0  ;;  %v1658_v34 = vld [vmem:[%s2131_s11 + $0x38] sm:$0xff]  }
 0x4c0   : > { %v923_v30 = vpop.xlane.xlu0 %922 }
 0x4c1   : > { %1673 = vrcp.f32 %v923_v30  ;;  %v1654_v30 = vld [vmem:[%s2131_s11 + $0x18] sm:$0xff]  }
 0x4c3   : > { %v1672_v36 = vpop.eup %1671 }
 0x4c4   : > { %v699_v32 = vpop.permute.xlu0 %698  ;;  %v809_v38 = vmul.f32 %v1672_v36, %v1664_v18 }
 0x4c5   : > { %v705_v33 = vsel %vm703_vm5, %v699_v32, 0  ;;  %v1656_v32 = vld [vmem:[%s2131_s11 + $0x28] sm:$0xff]  }
 0x4c6   : > { %1508 = vmatpush3.bf16.msra.mxu1 %v705_v33  ;;  %v810_v39 = vpack.c.bf16 %v809_v38, %v809_v38  ;;  %v1657_v33 = vld [vmem:[%s2131_s11 + $0x30] sm:$0xff]  }
 0x4c7   : > { %1519 = vmatprep.subr.bf16.mxu1 %v1761_v8 }
 0x4c8   : > { %v1044_v45 = vpop.permute.xlu0 %1043 }
 0x4c9   : > { %1510 = vmatmul.mubr.msk.bf16.vlgmr.msra.gmra.mrb[0].mxu1 %vm636_vm4, %v694_v35  ;;  %v1049_v47 = vsel %vm703_vm5, %v1044_v45, 0  ;;  %v1434_v35 = vld [vmem:[%s2130_s10] ss:$0 sm:$0xff] }
 0x4ca   : > { %1520 = vmatpush3.bf16.msra.mxu1 %v817_v37  ;;  %1521 = vmatprep.mubr.msk.bf16.mxu1 %vm1762_vm1, %v1761_v8 }
 0x4cb   : > { %1531 = vmatprep.subr.bf16.mxu1 %v1761_v8  ;;  %v1674_v40 = vpop.eup %1673 }
 0x4cc   : > { %v925_v42 = vmul.f32 %v1674_v40, %v1666_v20 }
 0x4ce   : > { %v926_v46 = vpack.c.bf16 %v925_v42, %v925_v42 }
 0x4d1   : > { %1522 = vmatmul.mubr.msk.bf16.vlgmr.msra.gmra.mrb[4].mxu1 %vm636_vm4, %v810_v39 }
 0x4d2   : > { %1533 = vmatprep.mubr.msk.bf16.mxu1 %vm1762_vm1, %v1761_v8 }
 0x4ed   : > { %v1039_v41 = vpop.xlane.xlu1 %1038 }
 0x4ee   : > { %1675 = vrcp.f32 %v1039_v41 }
 0x4f1   : > { %v928_v43 = vpop.permute.xlu1 %927 }
 0x4f2   : > { %v933_v44 = vsel %vm703_vm5, %v928_v43, 0 }
 0x4f3   : > { %1532 = vmatpush3.bf16.msra.mxu1 %v933_v44 }
 0x4f4   : > { %1543 = vmatprep.subr.bf16.mxu1 %v1761_v8 }
 0x4f6   : > { %1534 = vmatmul.mubr.msk.bf16.vlgmr.msra.gmra.mrb[8].mxu1 %vm636_vm4, %v926_v46 }
 0x4f7   : > { %1544 = vmatpush3.bf16.msra.mxu1 %v1049_v47  ;;  %1545 = vmatprep.mubr.msk.bf16.mxu1 %vm1762_vm1, %v1761_v8 }
 0x4f8   : > { %v1676_v48 = vpop.eup %1675  ;;  %1557 = vmatprep.subr.bf16.mxu1 %v1761_v8 }
 0x4f9   : > { %v1041_v49 = vmul.f32 %v1676_v48, %v1668_v25 }
 0x4fb   : > { %v1042_v50 = vpack.c.bf16 %v1041_v49, %v1041_v49 }
 0x4fe   : > { %1546 = vmatmul.mubr.msk.bf16.vlgmr.msra.gmra.mrb[12].mxu1 %vm636_vm4, %v1042_v50  ;;  %v1438_v50 = vld [vmem:[%s2132_s12] ss:$0 sm:$0xff] }
 0x4ff   : > { %1573 = vmatprep.mubr.msk.bf16.mxu1 %vm1762_vm1, %v1761_v8  ;;  %1558 = vmatpush3.bf16.msra.mxu1 %v1651_v27 }
 0x500   : > { %1559 = vmatprep.subr.bf16.mxu1 %v1761_v8 }
 0x503   : > { %1560 = vmatpush3.bf16.msra.mxu1 %v1652_v28 }
 0x504   : > { %1561 = vmatprep.subr.bf16.mxu1 %v1761_v8 }
 0x507   : > { %1562 = vmatpush3.bf16.msra.mxu1 %v1653_v29 }
 0x508   : > { %1563 = vmatprep.subr.bf16.mxu1 %v1761_v8 }
 0x50b   : > { %1564 = vmatpush3.bf16.msra.mxu1 %v1654_v30 }
 0x50c   : > { %1565 = vmatprep.subr.bf16.mxu1 %v1761_v8 }
 0x50f   : > { %1566 = vmatpush3.bf16.msra.mxu1 %v1655_v31 }
 0x510   : > { %1567 = vmatprep.subr.bf16.mxu1 %v1761_v8 }
 0x513   : > { %1568 = vmatpush3.bf16.msra.mxu1 %v1656_v32 }
 0x514   : > { %1569 = vmatprep.subr.bf16.mxu1 %v1761_v8 }
 0x517   : > { %1570 = vmatpush3.bf16.msra.mxu1 %v1657_v33 }
 0x518   : > { %1571 = vmatprep.subr.bf16.mxu1 %v1761_v8 }
 0x51b   : > { %1572 = vmatpush3.bf16.msra.mxu1 %v1658_v34 }
 0x59c   : > { %v741_v51 = vpop.f32.mrb[0].mxu1 }
 0x59d   : > { %747 = vst.msk [vmem:[#allocation4] sm:$0xff] %vm636_vm4, %v741_v51  ;;  %v1511_v52 = vpop.f32.mrb[1].mxu1 }
 0x59e   : > { %v744_v53 = vpop.f32.mrb[2].mxu1 }
 0x59f   : > { %v1512_v54 = vpop.f32.mrb[3].mxu1 }
 0x5a4   : > { %v853_v55 = vpop.f32.mrb[4].mxu1 }
 0x5a5   : > { %860 = vrot.lane.b32.xlu1 %v853_v55, %s1770_s22  ;;  %v1523_v56 = vpop.f32.mrb[5].mxu1  ;;  %s1411_s22 = sshll.u32 %s443_s19, 3 }
 0x5a6   : > { %v856_v57 = vpop.f32.mrb[6].mxu1  ;;  %s445_s0 = scalar_lea.vmem [#allocation5], %s1411_s22 }
 0x5a7   : > { %v1524_v58 = vpop.f32.mrb[7].mxu1  ;;  %s1334_s15 = sshll.u32 %s445_s0, 4  ;;  %s2074_s15 = int_to_ptr.vmem [resolvable:$true] %s1334_s15 }
 0x5a8   : > { %s1681_s22 = scalar_lea.vmem %s2074_s15, 128 }
 0x5a9   : > { %p1682_p12 = scmp.ne.s32.totalorder %s2074_s15, %s1681_s22 }
 0x5ab   : > { %p1683_p13 = pnand %p1682_p12, %p1884_p4 }
 0x5ad   : > { %p1684_p0 = pneg %p1683_p13 }
 0x5c9   : > { %v969_v59 = vpop.f32.mrb[8].mxu1 }
 0x5ca   : > { %976 = vrot.lane.b32.xlu0 %v969_v59, %s1771_s23  ;;  %v1535_v60 = vpop.f32.mrb[9].mxu1  ;;  %s1773_s23 = smov [#allocation5]  }
 0x5cb   : > { %v972_v61 = vpop.f32.mrb[10].mxu1 }
 0x5cc   : > { %v1536_v62 = vpop.f32.mrb[11].mxu1 }
 0x5d1   : > { %v1085_v63 = vpop.f32.mrb[12].mxu1 }
 0x5d2   : > { %1092 = vrot.lane.b32.xlu1 %v1085_v63, %s1772_s24  ;;  %v1547_v1 = vpop.f32.mrb[13].mxu1  ;;  %s1685_s24 = sshll.u32 %s1773_s23, 4  ;;  %s1686_s24 = int_to_ptr.vmem [resolvable:$false] %s1685_s24 }
 0x5d3   : > { %v1088_v2 = vpop.f32.mrb[14].mxu1  ;;  %s1687_s3 = scalar_lea.vmem %s1686_s24, 256  ;;  %p1688_p1 = scmp.lt.s32.totalorder %s2074_s15, %s1686_s24 }
 0x5d4   : > { %v1548_v3 = vpop.f32.mrb[15].mxu1  ;;  %p1689_p2 = scmp.lt.s32.totalorder %s1687_s3, %s1681_s22 }
 0x5d6   : > { %p1690_p3 = por %p1689_p2, %p1688_p1 }
 0x5d8   : > { %p1691_p5 = pnand %p1690_p3, %p1684_p0 }
 0x617   : > { %v861_v4 = vpop.permute.xlu1 %860 }
 0x618   : > { %864 = vst.msk [vmem:[#allocation4] sm:$0xff] %vm863_vm6, %v861_v4 }
 0x63c   : > { %v977_v5 = vpop.permute.xlu0 %976 }
 0x63d   : > { %980 = vst.msk [vmem:[#allocation4] sm:$0xff] %vm979_vm7, %v977_v5 }
 0x644   : > { %v1093_v6 = vpop.permute.xlu1 %1092 }
 0x645   : > { %1096 = vst.msk [vmem:[#allocation4] sm:$0xff] %vm1095_vm8, %v1093_v6 }
 0x64c   : > { %v1097_v7 = vld [vmem:[#allocation4] sm:$0xff] }
 0x64d   : > { %v2009_v9 = vadd.f32 %v1097_v7, %v1904_v0  ;;  %v1650_v0 = vld [vmem:[%s2129_s9 + $0x8] sm:$0xff]  }
 0x64e   : > { %1552 = vmatpush3.bf16.msra.mxu0 %v1650_v0 }
 0x64f   : > { %v1101_v10 = vsel %vm458_vm0, %v2009_v9, 0.0 }
 0x650   : > { %1102 = vadd.xlane.f32.xlu0 %v1101_v10 }
 0x6dd   : > { %v1103_v11 = vpop.xlane.xlu0 %1102 }
 0x6de   : > { %v1105_v12 = vmul.f32 0.03125, %v1103_v11 }
 0x6e0   : > { %v1106_v13 = vsub.f32 %v2009_v9, %v1105_v12 }
 0x6e2   : > { %v1107_v14 = vmul.f32 %v1106_v13, %v1106_v13 }
 0x6e4   : > { %v1108_v15 = vsel %vm458_vm0, %v1107_v14, 0.0 }
 0x6e5   : > { %1109 = vadd.xlane.f32.xlu1 %v1108_v15 }
 0x772   : > { %v1110_v17 = vpop.xlane.xlu1 %1109 }
 0x773   : > { %v1111_v18 = vmul.f32 0.03125, %v1110_v17 }
 0x775   : > { %v1112_v19 = vadd.f32 1e-05, %v1111_v18 }
 0x777   : > { %1677 = vrsqrt.f32 %v1112_v19 }
 0x781   : > { %v1678_v20 = vpop.eup %1677 }
 0x782   : > { %v1114_v22 = vmul.f32 %v1678_v20, %v1106_v13 }
 0x784   : > { %v1121_v24 = vmul.f32 %v1432_v21, %v1114_v22 }
 0x786   : > { %v1128_v25 = vadd.f32 %v1433_v23, %v1121_v24 }
 0x788   : > { %v1129_v26 = vpack.c.bf16 %v1128_v25, %v1128_v25 }
 0x78a   : > { %1554 = vmatmul.mubr.msk.bf16.vlgmr.msra.gmra.mrb[24].mxu0 %vm458_vm0, %v1129_v26 }
 0x85d   : > { %v1190_v36 = vpop.f32.mrb[24].mxu0 }
 0x85e   : > { %v1191_v37 = vadd.f32 %v1434_v35, %v1190_v36  ;;  %v1555_v38 = vpop.f32.mrb[25].mxu0 }
 0x85f   : > { %v1193_v39 = vpop.f32.mrb[26].mxu0 }
 0x860   : > { %v1196_v40 = vmul.f32 %v1191_v37, %v1191_v37  ;;  %v1556_v41 = vpop.f32.mrb[27].mxu0 }
 0x862   : > { %v1197_v42 = vmul.f32 %v1196_v40, %v1191_v37 }
 0x864   : > { %v1198_v43 = vmul.f32 0.044715, %v1197_v42 }
 0x866   : > { %v1199_v44 = vadd.f32 %v1198_v43, %v1191_v37 }
 0x868   : > { %v1200_v45 = vmul.f32 0.7978846, %v1199_v44 }
 0x86a   : > { %1679 = vtanh.f32 %v1200_v45 }
 0x874   : > { %v1680_v46 = vpop.eup %1679 }
 0x875   : > { %v1202_v8 = vadd.f32 1.0, %v1680_v46 }
 0x877   : > { %v1203_v47 = vmul.f32 0.5, %v1202_v8 }
 0x879   : > { %v1204_v48 = vmul.f32 %v1203_v47, %v1191_v37 }
 0x87b   : > { %v1205_v49 = vpack.c.bf16 %v1204_v48, %v1204_v48 }
 0x87d   : > { %1574 = vmatmul.mubr.bf16.vlgmr.msra.gmra.mrb[16].mxu1 %v1205_v49 }
 0x950   : > { %v1311_v51 = vpop.f32.mrb[16].mxu1 }
 0x951   : > { %v1312_v52 = vadd.f32 %v1438_v50, %v1311_v51  ;;  %v1575_v53 = vpop.f32.mrb[17].mxu1 }
 0x952   : > { %v1314_v54 = vpop.f32.mrb[18].mxu1 }
 0x953   : > { %v1317_v55 = vadd.f32 %v1312_v52, %v2009_v9  ;;  %v1576_v56 = vpop.f32.mrb[19].mxu1 }
 0x955   : > { %1318 = vst.msk [vmem:[%s445_s0] sm:$0xff] %vm458_vm0, %v1317_v55 }
 0x956   : > { %1694 = shalt.err (!%p1691_p5)
}
 0x957   : > { %s1695_s1 = scalar_lea.hbm %s2072_s2, 128  ;;  %s1699_s0 = scalar_lea.hbm %s2133_s13, 256 }
 0x958   : > { %p1696_p6 = scmp.ne.s32.totalorder %s2072_s2, %s1695_s1  ;;  %p1700_p10 = scmp.lt.u32.totalorder %s2072_s2, %s2133_s13 }
 0x959   : > { %p1701_p11 = scmp.lt.u32.totalorder %s1699_s0, %s1695_s1  ;;  %p1703_p13 = scmp.lt.u32.totalorder %s1695_s1, %s2072_s2 }
 0x95a   : > { %p1697_p7 = pnand %p1696_p6, %p1884_p4 }
 0x95b   : > { %p1702_p12 = por %p1701_p11, %p1700_p10 }
 0x95c   : > { %p1698_p9 = pneg %p1697_p7 }
 0x95d   : > { %p1704_p0 = por %p1703_p13, %p1702_p12 }
 0x95f   : > { %p1705_p1 = pnand %p1704_p0, %p1698_p9 }
 0x961   : > { %1708 = shalt.err (!%p1705_p1)
}
 0x962   : > { %1577 = dma.vmem_to_hbm [thread:$0]  (%p1884_p4), %s2074_s15, 128, %s2072_s2, %s1320_s28  }
 0x963 PF: > { %p1583_p2 = scmp.ge.s32.totalorder %s1759_s30, 2  ;;  %s1346_s3 = sand.u32 1, %s1739_s25  }
 0x964   : > { %s1347_s22 = scalar_lea.sflag [#allocation6], %s1346_s3 }
 0x965   : > { %p1580_p3 = pnand %p1583_p2, %p1891_p8 }
 0x967   : > { %1734 = dma.done.wait (!%p1580_p3), %s1347_s22, 128  }
 0x968   : > { %1736 = vsyncadd (!%p1580_p3), %s1347_s22, 4294967168  ;;  %s26_s30 = sadd.s32 1, %s1759_s30   ;;  %s2144_s25 = smov %s1743_s26 }
 0x969   : > { %p23_p5 = scmp.ge.s32.totalorder %s26_s30, 4   ;;  %s2145_s26 = smov %s1747_s27 }
 0x96a   : > { %s2146_s27 = smov %s1897_s21  ;;  %s2147_s28 = smov %s1755_s29 }
 0x96b   : > { %s2148_s29 = smov %s2150_s16  ;;  %25 = sbr.rel (!%p23_p5) target bundleno = 9 (0x9), region = 113 }
 0x972   :  { %1352 = vsyncpa [#allocation6], 1 }
 0x973   :  { %1354 = vsyncpa [#allocation6 + $0x1], 1 }

// kernel: tpu_custom_call.1
= control target key start
LH: loop header
LB: loop body
LE: loop exit
PB: predicated region body
PF: predicated region fallthrough
CT: control target
= control target key end

     0   :  { %s2120_s0 = inlined_call_operand.vmem [shape: f32[2,8,32], index: 0, kind: input, shape index: {}]   ;;  %s2121_s1 = inlined_call_operand.vmem [shape: f32[1,32], index: 1, kind: input, shape index: {}]   ;;  %s2122_s2 = inlined_call_operand.vmem [shape: f32[1,32], index: 2, kind: input, shape index: {}]   ;;  %s2123_s3 = inlined_call_operand.vmem [shape: bf16[32,32], index: 3, kind: input, shape index: {}]   ;;  %s2124_s4 = inlined_call_operand.vmem [shape: f32[1,32], index: 4, kind: input, shape index: {}]   ;;  %s2125_s5 = inlined_call_operand.vmem [shape: bf16[32,64], index: 5, kind: input, shape index: {}]   ;;  %s2126_s6 = inlined_call_operand.vmem [shape: f32[1,64], index: 6, kind: input, shape index: {}]   ;;  %s2127_s7 = inlined_call_operand.vmem [shape: f32[1,32], index: 7, kind: input, shape index: {}]   ;;  %s2128_s8 = inlined_call_operand.vmem [shape: f32[1,32], index: 8, kind: input, shape index: {}]   ;;  %s2129_s9 = inlined_call_operand.vmem [shape: bf16[32,128], index: 9, kind: input, shape index: {}]   ;;  %s2130_s10 = inlined_call_operand.vmem [shape: f32[1,128], index: 10, kind: input, shape index: {}]   ;;  %s2131_s11 = inlined_call_operand.vmem [shape: bf16[128,32], index: 11, kind: input, shape index: {}]   ;;  %s2132_s12 = inlined_call_operand.vmem [shape: f32[1,32], index: 12, kind: input, shape index: {}]   ;;  %s2133_s13 = inlined_call_operand.hbm [shape: f32[2,8,32], index: 13, kind: output, shape index: {}]  }
   0x1   :  { %2134 = sst [smem:[#allocation8_spill]] %s2120_s0 }
   0x2   :  { %2135 = sst [smem:[#allocation9_spill]] %s2121_s1 }
   0x3   :  { %2136 = sst [smem:[#allocation10_spill]] %s2122_s2 }
   0x4   :  { %2137 = sst [smem:[#allocation11_spill]] %s2123_s3 }
   0x5   :  { %18 = vsyncpa [#allocation6], 0 }
   0x6   :  { %20 = vsyncpa [#allocation6 + $0x1], 0  ;;  %s1844_s25 = smov 0   ;;  %s1846_s26 = smov 0  }
   0x7   :  { %s1848_s27 = smov 0   ;;  %s1850_s28 = smov 0  }
   0x8   :  { %s1852_s29 = smov 0   ;;  %s1854_s30 = smov 0  }
   0x9 LB: > { %s1406_s14 = sadd.s32 4294967295, %s1759_s30   ;;  %s1407_s15 = sadd.s32 4294967294, %s1759_s30   ;;  %s1759_s30 = sphi %s1854_s30, %s26_s30   ;;  %s1755_s29 = sphi %s1852_s29, %s2148_s29   ;;  %s1751_s28 = sphi %s1850_s28, %s2147_s28   ;;  %s1747_s27 = sphi %s1848_s27, %s2146_s27   ;;  %s1743_s26 = sphi %s1846_s26, %s2145_s26   ;;  %s1739_s25 = sphi %s1844_s25, %s2144_s25  }
   0xa   : > { %s38_s16 = sadd.s32 1, %s1755_s29  ;;  %s325_s17 = sadd.s32 1, %s1747_s27 }
   0xb   : > { %p40_p0 = scmp.ge.s32.totalorder %s38_s16, 2  ;;  %p335_p1 = scmp.ne.s32.totalorder %s1747_s27, %s1743_s26 }
   0xc   : > { %p336_p2 = scmp.eq.s32.totalorder %s1406_s14, 1  ;;  %p341_p3 = scmp.ne.s32.totalorder %s1743_s26, %s1739_s25 }
   0xd   : > { %s2150_s16 = smov (%p40_p0, %s38_s16), 0  ;;  %p342_p5 = scmp.eq.s32.totalorder %s1407_s15, 1 }
   0xe   : > { %p1884_p4 = por %p336_p2, %p335_p1  ;;  %s320_s19 = ssub.s32 %s1755_s29, %s2150_s16 }
   0xf   : > { %p1410_p6 = scmp.ge.s32.totalorder %s1759_s30, 1  ;;  %p323_p7 = scmp.eq.s32.totalorder %s320_s19, 0 }
  0x10   : > { %p1891_p8 = por %p342_p5, %p341_p3  ;;  %p403_p9 = scmp.lt.s32.totalorder %s1759_s30, 3 }
  0x11   : > { %s1897_s21 = scalar_select %p323_p7, %s1747_s27, %s325_s17  }
  0x12   : > { %p404_p10 = pnand %p1410_p6, %p403_p9 }
  0x13   : > { %p446_p11 = scmp.lt.s32.totalorder (!%p404_p10), %s1751_s28, 1  ;;  %vm458_vm0 = vcmask (!%p404_p10), 261120   ;;  %s2140_s0 = sld [smem:[#allocation8_spill]] (!%p404_p10)  ;;  %v1644_v7 = vld [vmem:[%s2125_s5] sm:$0xff] (!%p404_p10)   ;;  %v1761_v8 = vmov (!%p404_p10), 0.0   ;;  %vm1762_vm1 = vmmov (!%p404_p10), 0  }
  0x14   : > { %407 = sbr.rel (%p404_p10) target bundleno = 2403 (0x963), region = 72  ;;  %1485 = vmatprep.subr.bf16.mxu0 (!%p404_p10), %v1761_v8  ;;  %1489 = vmatprep.mubr.msk.bf16.mxu0 (!%p404_p10), %vm1762_vm1, %v1761_v8  ;;  %v1645_v9 = vld [vmem:[%s2125_s5 + $0x8] sm:$0xff] (!%p404_p10)   ;;  %s2141_s1 = sld [smem:[#allocation9_spill]] (!%p404_p10)  ;;  %vm488_vm2 = vcmask (!%p404_p10), 257024   ;;  %v1415_v23 = vld [vmem:[%s2126_s6] ss:$0 sm:$0xff] (!%p404_p10) }
  0x15   : > { %1486 = vmatpush3.bf16.msra.mxu0 (!%p404_p10), %v1644_v7  ;;  %1507 = vmatprep.subr.bf16.mxu1 (!%p404_p10), %v1761_v8  ;;  %s2142_s2 = sld [smem:[#allocation10_spill]] (!%p404_p10)  ;;  %s2143_s3 = sld [smem:[#allocation11_spill]] (!%p404_p10)  ;;  %vm557_vm3 = vcmask (!%p404_p10), 519168   ;;  %v1419_v32 = vld [vmem:[%s2124_s4] ss:$0 sm:$0xff] (!%p404_p10)  ;;  %vm636_vm4 = vcmask (!%p404_p10), 64512  }
  0x16   : > { %1487 = vmatprep.subr.bf16.mxu0 (!%p404_p10), %v1761_v8  ;;  %1509 = vmatprep.mubr.msk.bf16.mxu1 (!%p404_p10), %vm1762_vm1, %v1761_v8  ;;  %s1765_s24 = smov (!%p404_p10), 104   ;;  %s1766_s14 = smov (!%p404_p10), 88   ;;  %vm703_vm5 = vcmask (!%p404_p10), 1043456   ;;  %vm863_vm6 = vcmask (!%p404_p10), 130112   ;;  %vm979_vm7 = vcmask (!%p404_p10), 195712   ;;  %vm1095_vm8 = vcmask (!%p404_p10), 261312  }
  0x17   : > { %s1768_s17 = smov (!%p404_p10), 72   ;;  %s1769_s19 = smov (!%p404_p10), 80  }
  0x19   : > { %1488 = vmatpush3.bf16.msra.mxu0 (!%p404_p10), %v1645_v9 }
  0x1a   : > { %1493 = vmatprep.subr.bf16.mxu0 (!%p404_p10), %v1761_v8  ;;  %v1413_v14 = vld [vmem:[%s2141_s1] ss:$0 sm:$0xff] (!%p404_p10) }
  0x1b   : > { %s447_s22 = scalar_select %p446_p11, %s1751_s28, 1  ;;  %v1414_v16 = vld [vmem:[%s2142_s2] ss:$0 sm:$0xff]  ;;  %v1647_v21 = vld [vmem:[%s2143_s3 + $0x8] sm:$0xff]  }
  0x1c   : > { %v1646_v19 = vld [vmem:[%s2143_s3] sm:$0xff]  }
  0x1d   : > { %s1412_s23 = sshll.u32 %s447_s22, 3  ;;  %s1763_s22 = smov 112  }
  0x1e   : > { %s449_s15 = scalar_lea.vmem %s2140_s0, %s1412_s23  ;;  %s1764_s23 = smov 120  }
  0x1f   : > { %v1904_v0 = vld [vmem:[%s449_s15] sm:$0xff]  ;;  %s1767_s15 = smov 96  }
  0x20   : > { %v459_v1 = vsel %vm458_vm0, %v1904_v0, 0.0 }
  0x21   : > { %460 = vadd.xlane.f32.xlu0 %v459_v1 }
  0xae   : > { %v461_v2 = vpop.xlane.xlu0 %460 }
  0xaf   : > { %v463_v3 = vmul.f32 0.03125, %v461_v2 }
  0xb1   : > { %v464_v4 = vsub.f32 %v1904_v0, %v463_v3 }
  0xb3   : > { %v465_v5 = vmul.f32 %v464_v4, %v464_v4 }
  0xb5   : > { %v466_v6 = vsel %vm458_vm0, %v465_v5, 0.0 }
  0xb6   : > { %467 = vadd.xlane.f32.xlu0 %v466_v6 }
 0x143   : > { %v468_v10 = vpop.xlane.xlu0 %467 }
 0x144   : > { %v469_v11 = vmul.f32 0.03125, %v468_v10 }
 0x146   : > { %v470_v12 = vadd.f32 1e-05, %v469_v11 }
 0x148   : > { %1659 = vrsqrt.f32 %v470_v12 }
 0x152   : > { %v1660_v13 = vpop.eup %1659 }
 0x153   : > { %v472_v15 = vmul.f32 %v1660_v13, %v464_v4 }
 0x155   : > { %v479_v17 = vmul.f32 %v1413_v14, %v472_v15 }
 0x157   : > { %v486_v18 = vadd.f32 %v1414_v16, %v479_v17 }
 0x159   : > { %v487_v20 = vpack.c.bf16 %v486_v18, %v486_v18 }
 0x15b   : > { %489 = vst.msk [vmem:[#allocation2] sm:$0xf] %vm488_vm2, %v487_v20  ;;  %1490 = vmatmul.mubr.msk.bf16.vlgmr.msra.gmra.mrb[0].mxu0 %vm458_vm0, %v487_v20 }
 0x15c   : > { %1494 = vmatpush3.bf16.msra.mxu0 %v1646_v19  ;;  %1497 = vmatprep.mubr.msk.bf16.mxu0 %vm1762_vm1, %v1761_v8 }
 0x15d   : > { %1495 = vmatprep.subr.bf16.mxu0 %v1761_v8 }
 0x160   : > { %1496 = vmatpush3.bf16.msra.mxu0 %v1647_v21 }
 0x161   : > { %1501 = vmatprep.subr.bf16.mxu0 %v1761_v8 }
 0x162   : > { %v566_v22 = vld [vmem:[#allocation2] sm:$0xf] }
 0x163   : > { %1498 = vmatmul.mubr.msk.bf16.vlgmr.msra.gmra.mrb[4].mxu0 %vm458_vm0, %v566_v22 }
 0x164   : > { %1503 = vmatprep.mubr.msk.bf16.mxu0 %vm1762_vm1, %v1761_v8 }
 0x22e   : > { %v550_v24 = vpop.f32.mrb[0].mxu0 }
 0x22f   : > { %v551_v25 = vadd.f32 %v1415_v23, %v550_v24  ;;  %v1491_v26 = vpop.f32.mrb[1].mxu0 }
 0x230   : > { %v553_v27 = vpop.f32.mrb[2].mxu0 }
 0x231   : > { %v556_v28 = vpack.c.bf16 %v551_v25, %v551_v25  ;;  %v1492_v29 = vpop.f32.mrb[3].mxu0 }
 0x233   : > { %558 = vst.msk [vmem:[#allocation3] sm:$0xf] %vm557_vm3, %v556_v28 }
 0x236   : > { %v628_v30 = vpop.f32.mrb[4].mxu0 }
 0x237   : > { %v1499_v31 = vpop.f32.mrb[5].mxu0  ;;  %v629_v36 = vadd.f32 %v1419_v32, %v628_v30 }
 0x238   : > { %v631_v33 = vpop.f32.mrb[6].mxu0 }
 0x239   : > { %v1500_v34 = vpop.f32.mrb[7].mxu0  ;;  %v634_v39 = vpack.c.bf16 %v629_v36, %v629_v36 }
 0x23a   : > { %v635_v35 = vld [vmem:[#allocation3] sm:$0xf] }
 0x23b   : > { %v641_v37 = vsel %vm636_vm4, %v635_v35, 0  ;;  %v1951_v38 = vcombine.low %v635_v35, %v635_v35 }
 0x23c   : > { %1502 = vmatpush3.bf16.xpose.msra.mxu0 %v641_v37 }
 0x23d   : > { %867 = vrot.lane.b32.xlu0 %v1951_v38, %s1763_s22  ;;  %751 = vrot.lane.b32.xlu1 %v1951_v38, %s1764_s23 }
 0x23e   : > { %1513 = vmatprep.subr.bf16.mxu0 %v1761_v8 }
 0x241   : > { %749 = vrot.lane.b32.xlu1 %v634_v39, %s1764_s23  ;;  %s1771_s23 = smov 16  }
 0x243   : > { %1504 = vmatmul.mubr.msk.bf16.vlgmr.msra.gmra.mrb[8].mxu0 %vm636_vm4, %v634_v39 }
 0x244   : > { %1515 = vmatprep.mubr.msk.bf16.mxu0 %vm1762_vm1, %v1761_v8 }
 0x245   : > { %865 = vrot.lane.b32.xlu1 %v634_v39, %s1763_s22  ;;  %s1770_s22 = smov 8  }
 0x249   : > { %983 = vrot.lane.b32.xlu1 %v1951_v38, %s1765_s24 }
 0x24d   : > { %981 = vrot.lane.b32.xlu1 %v634_v39, %s1765_s24  ;;  %s1772_s24 = smov 24  }
 0x2af   : > { %v752_v40 = vpop.permute.xlu1 %751  ;;  %v868_v43 = vpop.permute.xlu0 %867 }
 0x2b0   : > { %v757_v41 = vsel %vm636_vm4, %v752_v40, 0  ;;  %v873_v45 = vsel %vm636_vm4, %v868_v43, 0 }
 0x2b1   : > { %1514 = vmatpush3.bf16.xpose.msra.mxu0 %v757_v41 }
 0x2b2   : > { %1525 = vmatprep.subr.bf16.mxu0 %v1761_v8 }
 0x2b3   : > { %v750_v42 = vpop.permute.xlu1 %749 }
 0x2b7   : > { %v866_v44 = vpop.permute.xlu1 %865 }
 0x2b8   : > { %1516 = vmatmul.mubr.msk.bf16.vlgmr.msra.gmra.mrb[12].mxu0 %vm636_vm4, %v750_v42 }
 0x2b9   : > { %1526 = vmatpush3.bf16.xpose.msra.mxu0 %v873_v45  ;;  %1527 = vmatprep.mubr.msk.bf16.mxu0 %vm1762_vm1, %v1761_v8 }
 0x2ba   : > { %1537 = vmatprep.subr.bf16.mxu0 %v1761_v8 }
 0x2bb   : > { %v984_v46 = vpop.permute.xlu1 %983 }
 0x2bc   : > { %v989_v47 = vsel %vm636_vm4, %v984_v46, 0 }
 0x2bf   : > { %v982_v48 = vpop.permute.xlu1 %981 }
 0x2c0   : > { %1528 = vmatmul.mubr.msk.bf16.vlgmr.msra.gmra.mrb[16].mxu0 %vm636_vm4, %v866_v44 }
 0x2c1   : > { %1538 = vmatpush3.bf16.xpose.msra.mxu0 %v989_v47  ;;  %1539 = vmatprep.mubr.msk.bf16.mxu0 %vm1762_vm1, %v1761_v8 }
 0x2c2   : > { %1549 = vmatprep.subr.bf16.mxu0 %v1761_v8 }
 0x2c8   : > { %1540 = vmatmul.mubr.msk.bf16.vlgmr.msra.gmra.mrb[20].mxu0 %vm636_vm4, %v982_v48 }
 0x2c9   : > { %1553 = vmatprep.mubr.msk.bf16.mxu0 %vm1762_vm1, %v1761_v8 }
 0x316   : > { %v677_v49 = vpop.f32.mrb[8].mxu0 }
 0x317   : > { %v1505_v50 = vpop.f32.mrb[9].mxu0  ;;  %v683_v51 = vsel %vm636_vm4, %v677_v49, -inf }
 0x318   : > { %684 = vmax.xlane.f32.xlu1 %v683_v51  ;;  %v680_v52 = vpop.f32.mrb[10].mxu0 }
 0x319   : > { %v1506_v53 = vpop.f32.mrb[11].mxu0 }
 0x38b   : > { %v793_v54 = vpop.f32.mrb[12].mxu0 }
 0x38c   : > { %v1517_v55 = vpop.f32.mrb[13].mxu0  ;;  %v799_v56 = vsel %vm636_vm4, %v793_v54, -inf }
 0x38d   : > { %800 = vmax.xlane.f32.xlu0 %v799_v56  ;;  %v796_v57 = vpop.f32.mrb[14].mxu0 }
 0x38e   : > { %v1518_v58 = vpop.f32.mrb[15].mxu0 }
 0x393   : > { %v909_v59 = vpop.f32.mrb[16].mxu0 }
 0x394   : > { %v1529_v60 = vpop.f32.mrb[17].mxu0  ;;  %v915_v61 = vsel %vm636_vm4, %v909_v59, -inf }
 0x395   : > { %916 = vmax.xlane.f32.xlu1 %v915_v61  ;;  %v912_v62 = vpop.f32.mrb[18].mxu0 }
 0x396   : > { %v1530_v63 = vpop.f32.mrb[19].mxu0 }
 0x39b   : > { %v1025_v1 = vpop.f32.mrb[20].mxu0 }
 0x39c   : > { %v1541_v2 = vpop.f32.mrb[21].mxu0  ;;  %v1031_v3 = vsel %vm636_vm4, %v1025_v1, -inf }
 0x39d   : > { %1032 = vmax.xlane.f32.xlu1 %v1031_v3  ;;  %v1028_v4 = vpop.f32.mrb[22].mxu0 }
 0x39e   : > { %v1542_v5 = vpop.f32.mrb[23].mxu0 }
 0x3a5   : > { %v685_v6 = vpop.xlane.xlu1 %684 }
 0x3a6   : > { %v686_v7 = vsub.f32 %v677_v49, %v685_v6 }
 0x3a8   : > { %v687_v9 = vmul.f32 1.442695, %v686_v7 }
 0x3aa   : > { %1661 = vpow2.f32 %v687_v9 }
 0x3b4   : > { %v1662_v10 = vpop.eup %1661 }
 0x3b5   : > { %v689_v11 = vsel %vm636_vm4, %v1662_v10, 0.0 }
 0x3b6   : > { %690 = vadd.xlane.f32.xlu0 %v689_v11 }
 0x41a   : > { %v801_v12 = vpop.xlane.xlu0 %800 }
 0x41b   : > { %v802_v13 = vsub.f32 %v793_v54, %v801_v12 }
 0x41d   : > { %v803_v14 = vmul.f32 1.442695, %v802_v13 }
 0x41f   : > { %1663 = vpow2.f32 %v803_v14 }
 0x422   : > { %v917_v15 = vpop.xlane.xlu1 %916 }
 0x423   : > { %v918_v16 = vsub.f32 %v909_v59, %v917_v15 }
 0x425   : > { %v919_v17 = vmul.f32 1.442695, %v918_v16  ;;  %v1649_v16 = vld [vmem:[%s2129_s9] sm:$0xff]  }
 0x426   : > { %1550 = vmatpush3.bf16.msra.mxu0 %v1649_v16 }
 0x427   : > { %1665 = vpow2.f32 %v919_v17  ;;  %1551 = vmatprep.subr.bf16.mxu0 %v1761_v8 }
 0x429   : > { %v1664_v18 = vpop.eup %1663 }
 0x42a   : > { %v805_v19 = vsel %vm636_vm4, %v1664_v18, 0.0  ;;  %v1033_v22 = vpop.xlane.xlu1 %1032 }
 0x42b   : > { %806 = vadd.xlane.f32.xlu1 %v805_v19  ;;  %v1034_v23 = vsub.f32 %v1025_v1, %v1033_v22 }
 0x42d   : > { %v1035_v24 = vmul.f32 1.442695, %v1034_v23  ;;  %v1433_v23 = vld [vmem:[%s2128_s8] ss:$0 sm:$0xff] }
 0x42f   : > { %1667 = vpow2.f32 %v1035_v24 }
 0x431   : > { %v1666_v20 = vpop.eup %1665 }
 0x432   : > { %v921_v21 = vsel %vm636_vm4, %v1666_v20, 0.0 }
 0x433   : > { %922 = vadd.xlane.f32.xlu0 %v921_v21  ;;  %v1432_v21 = vld [vmem:[%s2127_s7] ss:$0 sm:$0xff] }
 0x439   : > { %v1668_v25 = vpop.eup %1667 }
 0x43a   : > { %v1037_v26 = vsel %vm636_vm4, %v1668_v25, 0.0 }
 0x43c   : > { %811 = vrot.lane.b32.xlu1 %v1951_v38, %s1766_s14  ;;  %s1448_s14 = sshll.u32 %s1751_s28, 7 }
 0x43d   : > { %s2072_s2 = scalar_lea.hbm %s2133_s13, %s1448_s14 }
 0x443   : > { %v691_v27 = vpop.xlane.xlu0 %690 }
 0x444   : > { %1669 = vrcp.f32 %v691_v27  ;;  %v1651_v27 = vld [vmem:[%s2131_s11] sm:$0xff]  }
 0x449   : > { %698 = vrot.lane.b32.xlu0 %v1951_v38, %s1767_s15 }
 0x44d   : > { %1043 = vrot.lane.b32.xlu0 %v1951_v38, %s1768_s17 }
 0x44e   : > { %v1670_v29 = vpop.eup %1669 }
 0x44f   : > { %v693_v31 = vmul.f32 %v1670_v29, %v1662_v10  ;;  %v1653_v29 = vld [vmem:[%s2131_s11 + $0x10] sm:$0xff]  }
 0x451   : > { %v694_v35 = vpack.c.bf16 %v693_v31, %v693_v31  ;;  %v1655_v31 = vld [vmem:[%s2131_s11 + $0x20] sm:$0xff]  }
 0x460   : > { %1038 = vadd.xlane.f32.xlu1 %v1037_v26 }
 0x471   : > { %927 = vrot.lane.b32.xlu1 %v1951_v38, %s1769_s19  ;;  %s443_s19 = sand.u32 1, %s1743_s26  }
 0x472   : > { %s1320_s28 = scalar_lea.sflag [#allocation6], %s443_s19 }
 0x4b8   : > { %v807_v28 = vpop.xlane.xlu1 %806 }
 0x4b9   : > { %1671 = vrcp.f32 %v807_v28  ;;  %v1652_v28 = vld [vmem:[%s2131_s11 + $0x8] sm:$0xff]  }
 0x4bc   : > { %v812_v34 = vpop.permute.xlu1 %811 }
 0x4bd   : > { %v817_v37 = vsel %vm703_vm5, %v812_v34, 0  ;;  %v1658_v34 = vld [vmem:[%s2131_s11 + $0x38] sm:$0xff]  }
 0x4c0   : > { %v923_v30 = vpop.xlane.xlu0 %922 }
 0x4c1   : > { %1673 = vrcp.f32 %v923_v30  ;;  %v1654_v30 = vld [vmem:[%s2131_s11 + $0x18] sm:$0xff]  }
 0x4c3   : > { %v1672_v36 = vpop.eup %1671 }
 0x4c4   : > { %v699_v32 = vpop.permute.xlu0 %698  ;;  %v809_v38 = vmul.f32 %v1672_v36, %v1664_v18 }
 0x4c5   : > { %v705_v33 = vsel %vm703_vm5, %v699_v32, 0  ;;  %v1656_v32 = vld [vmem:[%s2131_s11 + $0x28] sm:$0xff]  }
 0x4c6   : > { %1508 = vmatpush3.bf16.msra.mxu1 %v705_v33  ;;  %v810_v39 = vpack.c.bf16 %v809_v38, %v809_v38  ;;  %v1657_v33 = vld [vmem:[%s2131_s11 + $0x30] sm:$0xff]  }
 0x4c7   : > { %1519 = vmatprep.subr.bf16.mxu1 %v1761_v8 }
 0x4c8   : > { %v1044_v45 = vpop.permute.xlu0 %1043 }
 0x4c9   : > { %1510 = vmatmul.mubr.msk.bf16.vlgmr.msra.gmra.mrb[0].mxu1 %vm636_vm4, %v694_v35  ;;  %v1049_v47 = vsel %vm703_vm5, %v1044_v45, 0  ;;  %v1434_v35 = vld [vmem:[%s2130_s10] ss:$0 sm:$0xff] }
 0x4ca   : > { %1520 = vmatpush3.bf16.msra.mxu1 %v817_v37  ;;  %1521 = vmatprep.mubr.msk.bf16.mxu1 %vm1762_vm1, %v1761_v8 }
 0x4cb   : > { %1531 = vmatprep.subr.bf16.mxu1 %v1761_v8  ;;  %v1674_v40 = vpop.eup %1673 }
 0x4cc   : > { %v925_v42 = vmul.f32 %v1674_v40, %v1666_v20 }
 0x4ce   : > { %v926_v46 = vpack.c.bf16 %v925_v42, %v925_v42 }
 0x4d1   : > { %1522 = vmatmul.mubr.msk.bf16.vlgmr.msra.gmra.mrb[4].mxu1 %vm636_vm4, %v810_v39 }
 0x4d2   : > { %1533 = vmatprep.mubr.msk.bf16.mxu1 %vm1762_vm1, %v1761_v8 }
 0x4ed   : > { %v1039_v41 = vpop.xlane.xlu1 %1038 }
 0x4ee   : > { %1675 = vrcp.f32 %v1039_v41 }
 0x4f1   : > { %v928_v43 = vpop.permute.xlu1 %927 }
 0x4f2   : > { %v933_v44 = vsel %vm703_vm5, %v928_v43, 0 }
 0x4f3   : > { %1532 = vmatpush3.bf16.msra.mxu1 %v933_v44 }
 0x4f4   : > { %1543 = vmatprep.subr.bf16.mxu1 %v1761_v8 }
 0x4f6   : > { %1534 = vmatmul.mubr.msk.bf16.vlgmr.msra.gmra.mrb[8].mxu1 %vm636_vm4, %v926_v46 }
 0x4f7   : > { %1544 = vmatpush3.bf16.msra.mxu1 %v1049_v47  ;;  %1545 = vmatprep.mubr.msk.bf16.mxu1 %vm1762_vm1, %v1761_v8 }
 0x4f8   : > { %v1676_v48 = vpop.eup %1675  ;;  %1557 = vmatprep.subr.bf16.mxu1 %v1761_v8 }
 0x4f9   : > { %v1041_v49 = vmul.f32 %v1676_v48, %v1668_v25 }
 0x4fb   : > { %v1042_v50 = vpack.c.bf16 %v1041_v49, %v1041_v49 }
 0x4fe   : > { %1546 = vmatmul.mubr.msk.bf16.vlgmr.msra.gmra.mrb[12].mxu1 %vm636_vm4, %v1042_v50  ;;  %v1438_v50 = vld [vmem:[%s2132_s12] ss:$0 sm:$0xff] }
 0x4ff   : > { %1573 = vmatprep.mubr.msk.bf16.mxu1 %vm1762_vm1, %v1761_v8  ;;  %1558 = vmatpush3.bf16.msra.mxu1 %v1651_v27 }
 0x500   : > { %1559 = vmatprep.subr.bf16.mxu1 %v1761_v8 }
 0x503   : > { %1560 = vmatpush3.bf16.msra.mxu1 %v1652_v28 }
 0x504   : > { %1561 = vmatprep.subr.bf16.mxu1 %v1761_v8 }
 0x507   : > { %1562 = vmatpush3.bf16.msra.mxu1 %v1653_v29 }
 0x508   : > { %1563 = vmatprep.subr.bf16.mxu1 %v1761_v8 }
 0x50b   : > { %1564 = vmatpush3.bf16.msra.mxu1 %v1654_v30 }
 0x50c   : > { %1565 = vmatprep.subr.bf16.mxu1 %v1761_v8 }
 0x50f   : > { %1566 = vmatpush3.bf16.msra.mxu1 %v1655_v31 }
 0x510   : > { %1567 = vmatprep.subr.bf16.mxu1 %v1761_v8 }
 0x513   : > { %1568 = vmatpush3.bf16.msra.mxu1 %v1656_v32 }
 0x514   : > { %1569 = vmatprep.subr.bf16.mxu1 %v1761_v8 }
 0x517   : > { %1570 = vmatpush3.bf16.msra.mxu1 %v1657_v33 }
 0x518   : > { %1571 = vmatprep.subr.bf16.mxu1 %v1761_v8 }
 0x51b   : > { %1572 = vmatpush3.bf16.msra.mxu1 %v1658_v34 }
 0x59c   : > { %v741_v51 = vpop.f32.mrb[0].mxu1 }
 0x59d   : > { %747 = vst.msk [vmem:[#allocation4] sm:$0xff] %vm636_vm4, %v741_v51  ;;  %v1511_v52 = vpop.f32.mrb[1].mxu1 }
 0x59e   : > { %v744_v53 = vpop.f32.mrb[2].mxu1 }
 0x59f   : > { %v1512_v54 = vpop.f32.mrb[3].mxu1 }
 0x5a4   : > { %v853_v55 = vpop.f32.mrb[4].mxu1 }
 0x5a5   : > { %860 = vrot.lane.b32.xlu1 %v853_v55, %s1770_s22  ;;  %v1523_v56 = vpop.f32.mrb[5].mxu1  ;;  %s1411_s22 = sshll.u32 %s443_s19, 3 }
 0x5a6   : > { %v856_v57 = vpop.f32.mrb[6].mxu1  ;;  %s445_s0 = scalar_lea.vmem [#allocation5], %s1411_s22 }
 0x5a7   : > { %v1524_v58 = vpop.f32.mrb[7].mxu1  ;;  %s1334_s15 = sshll.u32 %s445_s0, 4  ;;  %s2074_s15 = int_to_ptr.vmem [resolvable:$true] %s1334_s15 }
 0x5a8   : > { %s1681_s22 = scalar_lea.vmem %s2074_s15, 128 }
 0x5a9   : > { %p1682_p12 = scmp.ne.s32.totalorder %s2074_s15, %s1681_s22 }
 0x5ab   : > { %p1683_p13 = pnand %p1682_p12, %p1884_p4 }
 0x5ad   : > { %p1684_p0 = pneg %p1683_p13 }
 0x5c9   : > { %v969_v59 = vpop.f32.mrb[8].mxu1 }
 0x5ca   : > { %976 = vrot.lane.b32.xlu0 %v969_v59, %s1771_s23  ;;  %v1535_v60 = vpop.f32.mrb[9].mxu1  ;;  %s1773_s23 = smov [#allocation5]  }
 0x5cb   : > { %v972_v61 = vpop.f32.mrb[10].mxu1 }
 0x5cc   : > { %v1536_v62 = vpop.f32.mrb[11].mxu1 }
 0x5d1   : > { %v1085_v63 = vpop.f32.mrb[12].mxu1 }
 0x5d2   : > { %1092 = vrot.lane.b32.xlu1 %v1085_v63, %s1772_s24  ;;  %v1547_v1 = vpop.f32.mrb[13].mxu1  ;;  %s1685_s24 = sshll.u32 %s1773_s23, 4  ;;  %s1686_s24 = int_to_ptr.vmem [resolvable:$false] %s1685_s24 }
 0x5d3   : > { %v1088_v2 = vpop.f32.mrb[14].mxu1  ;;  %s1687_s3 = scalar_lea.vmem %s1686_s24, 256  ;;  %p1688_p1 = scmp.lt.s32.totalorder %s2074_s15, %s1686_s24 }
 0x5d4   : > { %v1548_v3 = vpop.f32.mrb[15].mxu1  ;;  %p1689_p2 = scmp.lt.s32.totalorder %s1687_s3, %s1681_s22 }
 0x5d6   : > { %p1690_p3 = por %p1689_p2, %p1688_p1 }
 0x5d8   : > { %p1691_p5 = pnand %p1690_p3, %p1684_p0 }
 0x617   : > { %v861_v4 = vpop.permute.xlu1 %860 }
 0x618   : > { %864 = vst.msk [vmem:[#allocation4] sm:$0xff] %vm863_vm6, %v861_v4 }
 0x63c   : > { %v977_v5 = vpop.permute.xlu0 %976 }
 0x63d   : > { %980 = vst.msk [vmem:[#allocation4] sm:$0xff] %vm979_vm7, %v977_v5 }
 0x644   : > { %v1093_v6 = vpop.permute.xlu1 %1092 }
 0x645   : > { %1096 = vst.msk [vmem:[#allocation4] sm:$0xff] %vm1095_vm8, %v1093_v6 }
 0x64c   : > { %v1097_v7 = vld [vmem:[#allocation4] sm:$0xff] }
 0x64d   : > { %v2009_v9 = vadd.f32 %v1097_v7, %v1904_v0  ;;  %v1650_v0 = vld [vmem:[%s2129_s9 + $0x8] sm:$0xff]  }
 0x64e   : > { %1552 = vmatpush3.bf16.msra.mxu0 %v1650_v0 }
 0x64f   : > { %v1101_v10 = vsel %vm458_vm0, %v2009_v9, 0.0 }
 0x650   : > { %1102 = vadd.xlane.f32.xlu0 %v1101_v10 }
 0x6dd   : > { %v1103_v11 = vpop.xlane.xlu0 %1102 }
 0x6de   : > { %v1105_v12 = vmul.f32 0.03125, %v1103_v11 }
 0x6e0   : > { %v1106_v13 = vsub.f32 %v2009_v9, %v1105_v12 }
 0x6e2   : > { %v1107_v14 = vmul.f32 %v1106_v13, %v1106_v13 }
 0x6e4   : > { %v1108_v15 = vsel %vm458_vm0, %v1107_v14, 0.0 }
 0x6e5   : > { %1109 = vadd.xlane.f32.xlu1 %v1108_v15 }
 0x772   : > { %v1110_v17 = vpop.xlane.xlu1 %1109 }
 0x773   : > { %v1111_v18 = vmul.f32 0.03125, %v1110_v17 }
 0x775   : > { %v1112_v19 = vadd.f32 1e-05, %v1111_v18 }
 0x777   : > { %1677 = vrsqrt.f32 %v1112_v19 }
 0x781   : > { %v1678_v20 = vpop.eup %1677 }
 0x782   : > { %v1114_v22 = vmul.f32 %v1678_v20, %v1106_v13 }
 0x784   : > { %v1121_v24 = vmul.f32 %v1432_v21, %v1114_v22 }
 0x786   : > { %v1128_v25 = vadd.f32 %v1433_v23, %v1121_v24 }
 0x788   : > { %v1129_v26 = vpack.c.bf16 %v1128_v25, %v1128_v25 }
 0x78a   : > { %1554 = vmatmul.mubr.msk.bf16.vlgmr.msra.gmra.mrb[24].mxu0 %vm458_vm0, %v1129_v26 }
 0x85d   : > { %v1190_v36 = vpop.f32.mrb[24].mxu0 }
 0x85e   : > { %v1191_v37 = vadd.f32 %v1434_v35, %v1190_v36  ;;  %v1555_v38 = vpop.f32.mrb[25].mxu0 }
 0x85f   : > { %v1193_v39 = vpop.f32.mrb[26].mxu0 }
 0x860   : > { %v1196_v40 = vmul.f32 %v1191_v37, %v1191_v37  ;;  %v1556_v41 = vpop.f32.mrb[27].mxu0 }
 0x862   : > { %v1197_v42 = vmul.f32 %v1196_v40, %v1191_v37 }
 0x864   : > { %v1198_v43 = vmul.f32 0.044715, %v1197_v42 }
 0x866   : > { %v1199_v44 = vadd.f32 %v1198_v43, %v1191_v37 }
 0x868   : > { %v1200_v45 = vmul.f32 0.7978846, %v1199_v44 }
 0x86a   : > { %1679 = vtanh.f32 %v1200_v45 }
 0x874   : > { %v1680_v46 = vpop.eup %1679 }
 0x875   : > { %v1202_v8 = vadd.f32 1.0, %v1680_v46 }
 0x877   : > { %v1203_v47 = vmul.f32 0.5, %v1202_v8 }
 0x879   : > { %v1204_v48 = vmul.f32 %v1203_v47, %v1191_v37 }
 0x87b   : > { %v1205_v49 = vpack.c.bf16 %v1204_v48, %v1204_v48 }
 0x87d   : > { %1574 = vmatmul.mubr.bf16.vlgmr.msra.gmra.mrb[16].mxu1 %v1205_v49 }
 0x950   : > { %v1311_v51 = vpop.f32.mrb[16].mxu1 }
 0x951   : > { %v1312_v52 = vadd.f32 %v1438_v50, %v1311_v51  ;;  %v1575_v53 = vpop.f32.mrb[17].mxu1 }
 0x952   : > { %v1314_v54 = vpop.f32.mrb[18].mxu1 }
 0x953   : > { %v1317_v55 = vadd.f32 %v1312_v52, %v2009_v9  ;;  %v1576_v56 = vpop.f32.mrb[19].mxu1 }
 0x955   : > { %1318 = vst.msk [vmem:[%s445_s0] sm:$0xff] %vm458_vm0, %v1317_v55 }
 0x956   : > { %1694 = shalt.err (!%p1691_p5)
}
 0x957   : > { %s1695_s1 = scalar_lea.hbm %s2072_s2, 128  ;;  %s1699_s0 = scalar_lea.hbm %s2133_s13, 256 }
 0x958   : > { %p1696_p6 = scmp.ne.s32.totalorder %s2072_s2, %s1695_s1  ;;  %p1700_p10 = scmp.lt.u32.totalorder %s2072_s2, %s2133_s13 }
 0x959   : > { %p1701_p11 = scmp.lt.u32.totalorder %s1699_s0, %s1695_s1  ;;  %p1703_p13 = scmp.lt.u32.totalorder %s1695_s1, %s2072_s2 }
 0x95a   : > { %p1697_p7 = pnand %p1696_p6, %p1884_p4 }
 0x95b   : > { %p1702_p12 = por %p1701_p11, %p1700_p10 }
 0x95c   : > { %p1698_p9 = pneg %p1697_p7 }
 0x95d   : > { %p1704_p0 = por %p1703_p13, %p1702_p12 }
 0x95f   : > { %p1705_p1 = pnand %p1704_p0, %p1698_p9 }
 0x961   : > { %1708 = shalt.err (!%p1705_p1)
}
 0x962   : > { %1577 = dma.vmem_to_hbm [thread:$0]  (%p1884_p4), %s2074_s15, 128, %s2072_s2, %s1320_s28  }
 0x963 PF: > { %p1583_p2 = scmp.ge.s32.totalorder %s1759_s30, 2  ;;  %s1346_s3 = sand.u32 1, %s1739_s25  }
 0x964   : > { %s1347_s22 = scalar_lea.sflag [#allocation6], %s1346_s3 }
 0x965   : > { %p1580_p3 = pnand %p1583_p2, %p1891_p8 }
 0x967   : > { %1734 = dma.done.wait (!%p1580_p3), %s1347_s22, 128  }
 0x968   : > { %1736 = vsyncadd (!%p1580_p3), %s1347_s22, 4294967168  ;;  %s26_s30 = sadd.s32 1, %s1759_s30   ;;  %s2144_s25 = smov %s1743_s26 }
 0x969   : > { %p23_p5 = scmp.ge.s32.totalorder %s26_s30, 4   ;;  %s2145_s26 = smov %s1747_s27 }
 0x96a   : > { %s2146_s27 = smov %s1897_s21  ;;  %s2147_s28 = smov %s1755_s29 }
 0x96b   : > { %s2148_s29 = smov %s2150_s16  ;;  %25 = sbr.rel (!%p23_p5) target bundleno = 9 (0x9), region = 113 }
 0x972   :  { %1352 = vsyncpa [#allocation6], 1 }
 0x973   :  { %1354 = vsyncpa [#allocation6 + $0x1], 1 }

</bundles_post_ra>
